<compile_context>
chip_gen: v5e
topology: v5e:2x2
jax: 0.10.0
libtpu: 0.0.40
codegen_flags: <defaults>
</compile_context>

<pallas_src>
import math

import numpy as np
import jax
import jax.numpy as jnp
from jax.experimental import pallas as pl
from jax.experimental.pallas import tpu as pltpu


def _round_up(a, b):
    return ((a + b - 1) // b) * b


def _nerf_pe_kernel(x_ref, sel_ref, freq_ref, mask_ref, o_ref):
    """One row tile.

    x_ref    : (TG, GF)  f32   -- G points packed per row (GF = G*F)
    sel_ref  : (GF, WG)  bf16  -- 0/1 selection matrix (resident constant)
    freq_ref : (1, WG)   f32   -- per-lane frequency  (resident constant)
    mask_ref : (1, WG)   f32   -- 1.0 on sin lanes, 0.0 on cos lanes
    o_ref    : (TG, WG)  f32   -- WG is a multiple of 128
    """
    x = x_ref[...]

    # Exact 3-way bf16 split: x == x1 + x2 + x3 (24 mantissa bits in 3x8).
    # Each bf16 matmul against the 0/1 matrix is exact, so the sum rebuilds x
    # bit-exactly in every mapped lane -- the MXU does the replication that
    # previously burned VPU/XLU slots on broadcasts and selects.
    x1 = x.astype(jnp.bfloat16)
    r1 = x - x1.astype(jnp.float32)
    x2 = r1.astype(jnp.bfloat16)
    x3 = (r1 - x2.astype(jnp.float32)).astype(jnp.bfloat16)

    sel = sel_ref[...]
    xrep = jnp.dot(x1, sel, preferred_element_type=jnp.float32)
    xrep = xrep + jnp.dot(x2, sel, preferred_element_type=jnp.float32)
    xrep = xrep + jnp.dot(x3, sel, preferred_element_type=jnp.float32)

    # Exact f32 angle, identical to the reference's `freq * x`.
    angles = xrep * freq_ref[...]
    is_sin = mask_ref[...] > 0.5
    o_ref[...] = jnp.where(is_sin, jnp.sin(angles), jnp.cos(angles))


def nerf_positional_encoding(x, *, max_freq_log2=10, num_freqs=6,
                             block_points=8192):
    """x: (N, F) float32 -> (N, F, 2*num_freqs) float32 (NeRF sin/cos encoding)."""
    n, f_dim = x.shape
    k = num_freqs
    w = 2 * k * f_dim                       # encoding width per point
    g = 128 // math.gcd(w, 128)             # points packed per kernel row
    gf, wg = g * f_dim, g * w               # wg % 128 == 0

    # freq_bands from __init__ (exact powers of two for the default params).
    freqs = np.asarray(2.0 ** np.linspace(0.0, float(max_freq_log2), k),
                       dtype=np.float32)

    # Trace-time constants (numpy): block-diagonal 0/1 selection matrix,
    # per-lane frequency row, per-lane sin/cos mask row.
    sel = np.zeros((gf, wg), np.float32)
    freq_row = np.zeros((1, wg), np.float32)
    sin_row = np.zeros((1, wg), np.float32)
    for gi in range(g):
        for f in range(f_dim):
            src = gi * f_dim + f
            base = gi * w + f * 2 * k
            sel[src, base:base + 2 * k] = 1.0
            freq_row[0, base:base + k] = freqs
            freq_row[0, base + k:base + 2 * k] = freqs
            sin_row[0, base:base + k] = 1.0
    sel = jnp.asarray(sel, dtype=jnp.bfloat16)       # 0/1: exact in bf16
    freq_row = jnp.asarray(freq_row)
    sin_row = jnp.asarray(sin_row)

    # Pack G points per row.  Pad ONLY if strictly required (N % G != 0); the
    # ragged trailing row tile of the grid itself needs no padding.
    n_pad = _round_up(n, g)
    xp = x if n_pad == n else jnp.pad(x, ((0, n_pad - n), (0, 0)))
    ng = n_pad // g
    xg = xp.reshape(ng, gf)                 # row-major -> free reshape

    # Row tile: multiple of 8 group-rows (or the full extent).  Sized so
    # 2x(in+out) blocks plus full-width temporaries fit v5e's 16 MiB default
    # scoped VMEM; raise block_points on v6e/v7x, keeping >= 2 grid blocks.
    tile_g = _round_up(max(1, min(block_points // g, ng)), 8)
    if tile_g >= ng:
        tile_g = ng                         # single full-extent block (legal)
    num_tiles = pl.cdiv(ng, tile_g)

    cost = pl.CostEstimate(
        flops=3 * 2 * ng * gf * wg,                    # three bf16 MXU passes
        transcendentals=2 * ng * wg,                   # sin + cos
        bytes_accessed=4 * ng * (gf + wg) + 2 * gf * wg + 8 * wg)

    out = pl.pallas_call(
        _nerf_pe_kernel,
        out_shape=jax.ShapeDtypeStruct((ng, wg), jnp.float32),
        grid_spec=pltpu.PrefetchScalarGridSpec(
            num_scalar_prefetch=0,
            grid=(num_tiles,),
            in_specs=[
                pl.BlockSpec((tile_g, gf), lambda i: (i, 0)),
                pl.BlockSpec((gf, wg), lambda i: (0, 0)),    # resident constants
                pl.BlockSpec((1, wg), lambda i: (0, 0)),
                pl.BlockSpec((1, wg), lambda i: (0, 0)),
            ],
            out_specs=pl.BlockSpec((tile_g, wg), lambda i: (i, 0)),
        ),
        compiler_params=pltpu.CompilerParams(
            dimension_semantics=("parallel",)),
        cost_estimate=cost,
    )(xg, sel, freq_row, sin_row)

    # Free row-major reshape back to the PyTorch (N, F, 2K) layout.
    out = out.reshape(n_pad, f_dim, 2 * k)
    return out if n_pad == n else out[:n]


def _reference(x, *, max_freq_log2=10, num_freqs=6):
    freqs = jnp.asarray(2.0 ** np.linspace(0.0, float(max_freq_log2), num_freqs),
                        dtype=jnp.float32)
    prod = x[:, :, None] * freqs[None, None, :]
    return jnp.concatenate([jnp.sin(prod), jnp.cos(prod)], axis=-1)


if __name__ == "__main__":
    key = jax.random.PRNGKey(0)
    k1, k2, k3 = jax.random.split(key, 3)

    # 19 NeRF-style 3-D points: N % G != 0 -> exercises the pad/slice fallback.
    x1 = jax.random.normal(k1, (19, 3), dtype=jnp.float32)
    out1 = jax.block_until_ready(nerf_positional_encoding(x1))
    ref1 = _reference(x1)
    assert out1.shape == (19, 3, 12), out1.shape
    assert jnp.allclose(out1, ref1, atol=1e-5, rtol=1e-5), "mismatch vs reference (x1)"

    # 32 points with 4 features: G=8 -> clean path, no pad, no output slice.
    x2 = jax.random.normal(k2, (32, 4), dtype=jnp.float32)
    out2 = jax.block_until_ready(nerf_positional_encoding(x2))
    ref2 = _reference(x2)
    assert out2.shape == (32, 4, 12), out2.shape
    assert jnp.allclose(out2, ref2, atol=1e-5, rtol=1e-5), "mismatch vs reference (x2)"

    # 4000 3-D points, small tile: multi-step grid with a ragged trailing row
    # tile handled by Pallas (no wrapper pad/slice since 4000 % 32 == 0).
    x3 = jax.random.normal(k3, (4000, 3), dtype=jnp.float32)
    out3 = jax.block_until_ready(nerf_positional_encoding(x3, block_points=1024))
    ref3 = _reference(x3)
    assert out3.shape == (4000, 3, 12), out3.shape
    assert jnp.allclose(out3, ref3, atol=1e-5, rtol=1e-5), "mismatch vs reference (x3)"

    print("KERNEL_OK")
</pallas_src>

<mosaic_0001>
module attributes {stable_mosaic.version = 11 : i64} {
  func.func @_nerf_pe_kernel(%arg0: i32, %arg1: memref<1x96xf32, #tpu.memory_space<vmem>>, %arg2: memref<96x1152xbf16, #tpu.memory_space<vmem>>, %arg3: memref<1x1152xf32, #tpu.memory_space<vmem>>, %arg4: memref<1x1152xf32, #tpu.memory_space<vmem>>, %arg5: memref<1x1152xf32, #tpu.memory_space<vmem>>) attributes {dimension_semantics = [#tpu.dimension_semantics<parallel>], iteration_bounds = array<i64: 1>, scalar_prefetch = 0 : i64, scratch_operands = 0 : i64, tpu.core_type = #tpu.core_type<tc>, window_params = [{transform_indices = @transform_0, window_bounds = array<i64: 1, 96>}, {pipeline_mode = #tpu.pipeline_mode<synchronous>, transform_indices = @transform_1, window_bounds = array<i64: 96, 1152>}, {pipeline_mode = #tpu.pipeline_mode<synchronous>, transform_indices = @transform_2, window_bounds = array<i64: 1, 1152>}, {pipeline_mode = #tpu.pipeline_mode<synchronous>, transform_indices = @transform_3, window_bounds = array<i64: 1, 1152>}, {transform_indices = @transform_4, window_bounds = array<i64: 1, 1152>}]} {
    %c0 = arith.constant 0 : index
    %c0_0 = arith.constant 0 : index
    %0 = vector.load %arg1[%c0, %c0_0] : memref<1x96xf32, #tpu.memory_space<vmem>>, vector<1x96xf32>
    %1 = arith.truncf %0 : vector<1x96xf32> to vector<1x96xbf16>
    %2 = arith.extf %1 : vector<1x96xbf16> to vector<1x96xf32>
    %3 = arith.subf %0, %2 : vector<1x96xf32>
    %4 = arith.truncf %3 : vector<1x96xf32> to vector<1x96xbf16>
    %5 = arith.extf %4 : vector<1x96xbf16> to vector<1x96xf32>
    %6 = arith.subf %3, %5 : vector<1x96xf32>
    %7 = arith.truncf %6 : vector<1x96xf32> to vector<1x96xbf16>
    %c0_1 = arith.constant 0 : index
    %c0_2 = arith.constant 0 : index
    %8 = vector.load %arg2[%c0_1, %c0_2] : memref<96x1152xbf16, #tpu.memory_space<vmem>>, vector<96x1152xbf16>
    %cst = arith.constant dense<0.000000e+00> : vector<1x1152xf32>
    %9 = tpu.matmul %1, %8, %cst {dimension_numbers = #tpu.dot_dimension_numbers<[1], [0], [0], [1], [0, 0, 1, 1], [], []>} : vector<1x96xbf16>, vector<96x1152xbf16>, vector<1x1152xf32> -> vector<1x1152xf32>
    %cst_3 = arith.constant dense<0.000000e+00> : vector<1x1152xf32>
    %10 = tpu.matmul %4, %8, %cst_3 {dimension_numbers = #tpu.dot_dimension_numbers<[1], [0], [0], [1], [0, 0, 1, 1], [], []>} : vector<1x96xbf16>, vector<96x1152xbf16>, vector<1x1152xf32> -> vector<1x1152xf32>
    %11 = arith.addf %9, %10 : vector<1x1152xf32>
    %cst_4 = arith.constant dense<0.000000e+00> : vector<1x1152xf32>
    %12 = tpu.matmul %7, %8, %cst_4 {dimension_numbers = #tpu.dot_dimension_numbers<[1], [0], [0], [1], [0, 0, 1, 1], [], []>} : vector<1x96xbf16>, vector<96x1152xbf16>, vector<1x1152xf32> -> vector<1x1152xf32>
    %13 = arith.addf %11, %12 : vector<1x1152xf32>
    %c0_5 = arith.constant 0 : index
    %c0_6 = arith.constant 0 : index
    %14 = vector.load %arg3[%c0_5, %c0_6] : memref<1x1152xf32, #tpu.memory_space<vmem>>, vector<1x1152xf32>
    %15 = arith.mulf %13, %14 : vector<1x1152xf32>
    %c0_7 = arith.constant 0 : index
    %c0_8 = arith.constant 0 : index
    %16 = vector.load %arg4[%c0_7, %c0_8] : memref<1x1152xf32, #tpu.memory_space<vmem>>, vector<1x1152xf32>
    %cst_9 = arith.constant 5.000000e-01 : f32
    %17 = vector.broadcast %cst_9 : f32 to vector<1x1152xf32>
    %18 = arith.cmpf ogt, %16, %17 : vector<1x1152xf32>
    %19 = math.sin %15 : vector<1x1152xf32>
    %20 = math.cos %15 : vector<1x1152xf32>
    %21 = arith.select %18, %19, %20 : vector<1x1152xi1>, vector<1x1152xf32>
    %c0_10 = arith.constant 0 : index
    %c0_11 = arith.constant 0 : index
    %22 = vector.load %arg5[%c0_10, %c0_11] : memref<1x1152xf32, #tpu.memory_space<vmem>>, vector<1x1152xf32>
    tpu.vector_store %arg5[%c0_10, %c0_11], %21 {strides = array<i32>} : memref<1x1152xf32, #tpu.memory_space<vmem>>, vector<1x1152xf32>,
    return
  }
  func.func @transform_0(%arg0: i32) -> (i32, i32) {
    %c0_i32 = arith.constant 0 : i32
    %c0_i32_0 = arith.constant 0 : i32
    return %arg0, %c0_i32 : i32, i32
  }
  func.func @transform_1(%arg0: i32) -> (i32, i32) {
    %c0_i32 = arith.constant 0 : i32
    %c0_i32_0 = arith.constant 0 : i32
    %c0_i32_1 = arith.constant 0 : i32
    return %c0_i32, %c0_i32_0 : i32, i32
  }
  func.func @transform_2(%arg0: i32) -> (i32, i32) {
    %c0_i32 = arith.constant 0 : i32
    %c0_i32_0 = arith.constant 0 : i32
    %c0_i32_1 = arith.constant 0 : i32
    return %c0_i32, %c0_i32_0 : i32, i32
  }
  func.func @transform_3(%arg0: i32) -> (i32, i32) {
    %c0_i32 = arith.constant 0 : i32
    %c0_i32_0 = arith.constant 0 : i32
    %c0_i32_1 = arith.constant 0 : i32
    return %c0_i32, %c0_i32_0 : i32, i32
  }
  func.func @transform_4(%arg0: i32) -> (i32, i32) {
    %c0_i32 = arith.constant 0 : i32
    %c0_i32_0 = arith.constant 0 : i32
    return %arg0, %c0_i32 : i32, i32
  }
}

</mosaic_0001>

<bundles_post_ra>
// kernel: tpu_custom_call.1
= control target key start
LH: loop header
LB: loop body
LE: loop exit
PB: predicated region body
PF: predicated region fallthrough
CT: control target
= control target key end

     0   :  { %9 = vsyncpa [#allocation3], 0  ;;  %s5958_s0 = inlined_call_operand.hbm [shape: f32[1,96], index: 0, kind: input, shape index: {}]   ;;  %s5959_s1 = inlined_call_operand.hbm [shape: bf16[96,1152], index: 1, kind: input, shape index: {}]   ;;  %s5960_s2 = inlined_call_operand.hbm [shape: f32[1,1152], index: 2, kind: input, shape index: {}]   ;;  %s5961_s3 = inlined_call_operand.hbm [shape: f32[1,1152], index: 3, kind: input, shape index: {}]   ;;  %s5962_s4 = inlined_call_operand.hbm [shape: f32[1,1152], index: 4, kind: output, shape index: {}]  }
   0x1   :  { %10 = vsyncpa [#allocation6], 0 }
   0x2   :  { %11 = vsyncpa [#allocation9], 0  ;;  %s28_s17 = sshll.u32 %s5959_s1, 4  ;;  %s29_s17 = int_to_ptr.hbm [resolvable:$true] %s28_s17 }
   0x3   :  { %12 = vsyncpa [#allocation4], 0  ;;  %s4181_s18 = smov [#allocation5]   ;;  %s18_s22 = sshll.u32 %s5958_s0, 4  ;;  %s19_s22 = int_to_ptr.hbm [resolvable:$true] %s18_s22 }
   0x4   :  { %s30_s19 = sshll.u32 %s4181_s18, 4  ;;  %s4182_s23 = smov 576   ;;  %s31_s19 = int_to_ptr.vmem [resolvable:$true] %s30_s19 }
   0x5   :  { %s4183_s24 = smov 36   ;;  %s4184_s25 = smov [#allocation2]  }
   0x6   :  { %36 = dma.hbm_to_vmem [thread:$0]  %s29_s17, 6912, %s31_s19, [#allocation6], %s4182_s23, %s4182_s23, %s4183_s24  }
   0x7   :  { %s20_s26 = sshll.u32 %s4184_s25, 4  ;;  %s42_s29 = sshll.u32 %s5960_s2, 4  ;;  %s21_s26 = int_to_ptr.vmem [resolvable:$true] %s20_s26  ;;  %s43_s29 = int_to_ptr.hbm [resolvable:$true] %s42_s29 }
   0x8   :  { %23 = dma.hbm_to_vmem [thread:$0]  %s19_s22, 16, %s21_s26, [#allocation3]  }
   0x9   :  { %s53_s5 = sshll.u32 %s5961_s3, 4  ;;  %s4185_s6 = smov [#allocation7]   ;;  %s54_s5 = int_to_ptr.hbm [resolvable:$true] %s53_s5 }
   0xa   :  { %s44_s7 = sshll.u32 %s4185_s6, 4  ;;  %s4186_s0 = smov [#allocation8]   ;;  %s45_s7 = int_to_ptr.vmem [resolvable:$true] %s44_s7 }
   0xb   :  { %47 = dma.hbm_to_vmem [thread:$0]  %s43_s29, 144, %s45_s7, [#allocation6]  }
   0xc   :  { %s55_s8 = sshll.u32 %s4186_s0, 4  ;;  %s56_s8 = int_to_ptr.vmem [resolvable:$true] %s55_s8 }
   0xd   :  { %58 = dma.hbm_to_vmem [thread:$0]  %s54_s5, 144, %s56_s8, [#allocation9]  }
   0xe   :  { %4173 = dma.done.wait [#allocation3], 16  }
   0xf   :  { %4174 = vsyncadd [#allocation3], 4294967280 }
  0x10   :  { %4175 = dma.done.wait [#allocation6], 7056  }
  0x11   :  { %4176 = vsyncadd [#allocation6], 4294960240 }
  0x12   :  { %4177 = dma.done.wait [#allocation9], 144  }
  0x13   :  { %4178 = vsyncadd [#allocation9], 4294967152  ;;  %v3868_v0 = vld [vmem:[#allocation5 + $0x168] sm:$0xf]  ;;  %v4032_v1 = vld [vmem:[#allocation5 + $0x188] sm:$0xf0] }
  0x14   :  { %v4028_v2 = vld [vmem:[#allocation5 + $0x16c] sm:$0xf]  ;;  %v4232_v3 = vor.u32 %v4032_v1, %v3868_v0  ;;  %v3870_v4 = vld [vmem:[#allocation5 + $0x18c] sm:$0xf0]  ;;  %v4033_v6 = vld [vmem:[#allocation5 + $0x190] sm:$0xf0] }
  0x15   :  { %v3876_v5 = vld [vmem:[#allocation5 + $0x170] sm:$0xf]  ;;  %v4234_v7 = vor.u32 %v4028_v2, %v3870_v4  ;;  %v4029_v9 = vld [vmem:[#allocation5 + $0x174] sm:$0xf]  ;;  %v3878_v10 = vld [vmem:[#allocation5 + $0x194] sm:$0xf0] }
  0x16   :  { %v4236_v8 = vor.u32 %v4033_v6, %v3876_v5  ;;  %v3832_v11 = vld [vmem:[#allocation5 + $0x120] sm:$0xf]  ;;  %426 = vmatpush.bf16.msra.mxu0 %v4232_v3  ;;  %v4239_v12 = vor.u32 %v4029_v9, %v3878_v10  ;;  %v4023_v13 = vld [vmem:[#allocation5 + $0x140] sm:$0xf0]  ;;  %v3834_v15 = vld [vmem:[#allocation5 + $0x144] sm:$0xf0] }
  0x17   :  { %v4019_v14 = vld [vmem:[#allocation5 + $0x124] sm:$0xf]  ;;  %439 = vmatpush.bf16.msra.mxu1 %v4234_v7  ;;  %v4243_v16 = vor.u32 %v4023_v13, %v3832_v11  ;;  %v3840_v18 = vld [vmem:[#allocation5 + $0x128] sm:$0xf]  ;;  %v4024_v19 = vld [vmem:[#allocation5 + $0x148] sm:$0xf0] }
  0x18   :  { %452 = vmatpush.bf16.msra.mxu2 %v4236_v8  ;;  %v4245_v17 = vor.u32 %v4019_v14, %v3834_v15  ;;  %v4020_v20 = vld [vmem:[#allocation5 + $0x12c] sm:$0xf]  ;;  %465 = vmatpush.bf16.msra.mxu3 %v4239_v12  ;;  %v4248_v21 = vor.u32 %v4024_v19, %v3840_v18  ;;  %v3842_v22 = vld [vmem:[#allocation5 + $0x14c] sm:$0xf0]  ;;  %v3796_v23 = vld [vmem:[#allocation5 + $0xd8] sm:$0xf] }
  0x19   :  { %v4014_v24 = vld [vmem:[#allocation5 + $0xf8] sm:$0xf0]  ;;  %v4250_v25 = vor.u32 %v4020_v20, %v3842_v22  ;;  %v3798_v27 = vld [vmem:[#allocation5 + $0xfc] sm:$0xf0]  ;;  %v4015_v30 = vld [vmem:[#allocation5 + $0x100] sm:$0xf0] }
  0x1a   :  { %v4010_v26 = vld [vmem:[#allocation5 + $0xdc] sm:$0xf]  ;;  %v3804_v28 = vld [vmem:[#allocation5 + $0xe0] sm:$0xf]  ;;  %427 = vmatpush.bf16.msra.mxu0 %v4243_v16  ;;  %v4253_v29 = vor.u32 %v4014_v24, %v3796_v23  ;;  %v4011_v31 = vld [vmem:[#allocation5 + $0xe4] sm:$0xf] }
  0x1b   :  { %v3806_v32 = vld [vmem:[#allocation5 + $0x104] sm:$0xf0]  ;;  %440 = vmatpush.bf16.msra.mxu1 %v4245_v17  ;;  %v4257_v33 = vor.u32 %v4010_v26, %v3798_v27  ;;  %v4259_v34 = vor.u32 %v4015_v30, %v3804_v28  ;;  %v3760_v35 = vld [vmem:[#allocation5 + $0x90] sm:$0xf]  ;;  %v4005_v36 = vld [vmem:[#allocation5 + $0xb0] sm:$0xf0] }
  0x1c   :  { %453 = vmatpush.bf16.msra.mxu2 %v4248_v21  ;;  %v4001_v37 = vld [vmem:[#allocation5 + $0x94] sm:$0xf]  ;;  %466 = vmatpush.bf16.msra.mxu3 %v4250_v25  ;;  %v4262_v38 = vor.u32 %v4011_v31, %v3806_v32  ;;  %v3762_v39 = vld [vmem:[#allocation5 + $0xb4] sm:$0xf0]  ;;  %v4006_v41 = vld [vmem:[#allocation5 + $0xb8] sm:$0xf0]  ;;  %v4265_v44 = vor.u32 %v4005_v36, %v3760_v35 }
  0x1d   :  { %v3768_v40 = vld [vmem:[#allocation5 + $0x98] sm:$0xf]  ;;  %v4002_v42 = vld [vmem:[#allocation5 + $0x9c] sm:$0xf]  ;;  %v3770_v43 = vld [vmem:[#allocation5 + $0xbc] sm:$0xf0]  ;;  %v4269_v45 = vor.u32 %v4001_v37, %v3762_v39 }
  0x1e   :  { %428 = vmatpush.bf16.msra.mxu0 %v4253_v29  ;;  %v4271_v46 = vor.u32 %v4006_v41, %v3768_v40  ;;  %v3724_v47 = vld [vmem:[#allocation5 + $0x48] sm:$0xf]  ;;  %v3996_v48 = vld [vmem:[#allocation5 + $0x68] sm:$0xf0]  ;;  %v4274_v50 = vor.u32 %v4002_v42, %v3770_v43  ;;  %v3726_v51 = vld [vmem:[#allocation5 + $0x6c] sm:$0xf0] }
  0x1f   :  { %441 = vmatpush.bf16.msra.mxu1 %v4257_v33  ;;  %v3992_v49 = vld [vmem:[#allocation5 + $0x4c] sm:$0xf]  ;;  %v3732_v52 = vld [vmem:[#allocation5 + $0x50] sm:$0xf]  ;;  %v3997_v53 = vld [vmem:[#allocation5 + $0x70] sm:$0xf0]  ;;  %v4277_v56 = vor.u32 %v3996_v48, %v3724_v47 }
  0x20   :  { %454 = vmatpush.bf16.msra.mxu2 %v4259_v34  ;;  %467 = vmatpush.bf16.msra.mxu3 %v4262_v38  ;;  %v3993_v54 = vld [vmem:[#allocation5 + $0x54] sm:$0xf]  ;;  %v3734_v55 = vld [vmem:[#allocation5 + $0x74] sm:$0xf0]  ;;  %v3688_v57 = vld [vmem:[#allocation5] sm:$0xf]  ;;  %v4281_v59 = vor.u32 %v3992_v49, %v3726_v51  ;;  %v4283_v60 = vor.u32 %v3997_v53, %v3732_v52 }
  0x21   :  { %v3987_v58 = vld [vmem:[#allocation5 + $0x20] sm:$0xf0]  ;;  %v3690_v62 = vld [vmem:[#allocation5 + $0x24] sm:$0xf0]  ;;  %v4286_v0 = vor.u32 %v3993_v54, %v3734_v55  ;;  %v3988_v1 = vld [vmem:[#allocation5 + $0x28] sm:$0xf0] }
  0x22   :  { %429 = vmatpush.bf16.msra.mxu0 %v4265_v44  ;;  %v3983_v61 = vld [vmem:[#allocation5 + $0x4] sm:$0xf]  ;;  %v3696_v63 = vld [vmem:[#allocation5 + $0x8] sm:$0xf]  ;;  %v3984_v2 = vld [vmem:[#allocation5 + $0xc] sm:$0xf]  ;;  %v4289_v10 = vor.u32 %v3987_v58, %v3688_v57 }
  0x23   :  { %442 = vmatpush.bf16.msra.mxu1 %v4269_v45  ;;  %v3698_v4 = vld [vmem:[#allocation5 + $0x2c] sm:$0xf0]  ;;  %v3884_v5 = vld [vmem:[#allocation5 + $0x178] sm:$0xf]  ;;  %v4034_v6 = vld [vmem:[#allocation5 + $0x198] sm:$0xf0]  ;;  %v4293_v15 = vor.u32 %v3983_v61, %v3690_v62  ;;  %v4295_v18 = vor.u32 %v3988_v1, %v3696_v63 }
  0x24   :  { %455 = vmatpush.bf16.msra.mxu2 %v4271_v46  ;;  %468 = vmatpush.bf16.msra.mxu3 %v4274_v50  ;;  %v4030_v9 = vld [vmem:[#allocation5 + $0x17c] sm:$0xf]  ;;  %v3886_v11 = vld [vmem:[#allocation5 + $0x19c] sm:$0xf0]  ;;  %v4035_v14 = vld [vmem:[#allocation5 + $0x1a0] sm:$0xf0]  ;;  %v4298_v22 = vor.u32 %v3984_v2, %v3698_v4  ;;  %v4300_v23 = vor.u32 %v4034_v6, %v3884_v5 }
  0x25   :  { %v3892_v13 = vld [vmem:[#allocation5 + $0x180] sm:$0xf]  ;;  %v4031_v19 = vld [vmem:[#allocation5 + $0x184] sm:$0xf]  ;;  %v3894_v20 = vld [vmem:[#allocation5 + $0x1a4] sm:$0xf0]  ;;  %v4302_v24 = vor.u32 %v4030_v9, %v3886_v11 }
  0x26   :  { %430 = vmatpush.bf16.msra.mxu0 %v4277_v56  ;;  %v4304_v26 = vor.u32 %v4035_v14, %v3892_v13  ;;  %v3848_v27 = vld [vmem:[#allocation5 + $0x130] sm:$0xf]  ;;  %v4025_v28 = vld [vmem:[#allocation5 + $0x150] sm:$0xf0]  ;;  %v4307_v31 = vor.u32 %v4031_v19, %v3894_v20  ;;  %v3850_v32 = vld [vmem:[#allocation5 + $0x154] sm:$0xf0] }
  0x27   :  { %443 = vmatpush.bf16.msra.mxu1 %v4281_v59  ;;  %v4021_v30 = vld [vmem:[#allocation5 + $0x134] sm:$0xf]  ;;  %v3856_v35 = vld [vmem:[#allocation5 + $0x138] sm:$0xf]  ;;  %v4026_v36 = vld [vmem:[#allocation5 + $0x158] sm:$0xf0]  ;;  %v4313_v41 = vor.u32 %v4025_v28, %v3848_v27 }
  0x28   :  { %456 = vmatpush.bf16.msra.mxu2 %v4283_v60  ;;  %469 = vmatpush.bf16.msra.mxu3 %v4286_v0  ;;  %v4022_v37 = vld [vmem:[#allocation5 + $0x13c] sm:$0xf]  ;;  %v3858_v39 = vld [vmem:[#allocation5 + $0x15c] sm:$0xf0]  ;;  %v4319_v43 = vor.u32 %v4021_v30, %v3850_v32  ;;  %v4321_v47 = vor.u32 %v4026_v36, %v3856_v35  ;;  %v3812_v48 = vld [vmem:[#allocation5 + $0xe8] sm:$0xf] }
  0x29   :  { %v76_v40 = vld [vmem:[#allocation2] sm:$0x1]  ;;  %v4016_v49 = vld [vmem:[#allocation5 + $0x108] sm:$0xf0]  ;;  %v4324_v52 = vor.u32 %v4022_v37, %v3858_v39  ;;  %v3814_v53 = vld [vmem:[#allocation5 + $0x10c] sm:$0xf0] }
  0x2a   :  { %431 = vmatpush.bf16.msra.mxu0 %v4289_v10  ;;  %v4315_v42 = vpack.c.bf16 %v76_v40, %v76_v40  ;;  %v4012_v51 = vld [vmem:[#allocation5 + $0xec] sm:$0xf]  ;;  %v3820_v54 = vld [vmem:[#allocation5 + $0xf0] sm:$0xf]  ;;  %v4017_v55 = vld [vmem:[#allocation5 + $0x110] sm:$0xf0]  ;;  %v4328_v62 = vor.u32 %v4016_v49, %v3812_v48 }
  0x2b   :  { %444 = vmatpush.bf16.msra.mxu1 %v4293_v15  ;;  %v4013_v58 = vld [vmem:[#allocation5 + $0xf4] sm:$0xf]  ;;  %v3822_v61 = vld [vmem:[#allocation5 + $0x114] sm:$0xf0]  ;;  %vm420_vm0 = vcmask 785408   ;;  %v4334_v1 = vor.u32 %v4012_v51, %v3814_v53  ;;  %v4336_v2 = vor.u32 %v4017_v55, %v3820_v54  ;;  %s4194_s2 = smov [#allocation10]  }
  0x2c   :  { %457 = vmatpush.bf16.msra.mxu2 %v4295_v18  ;;  %470 = vmatpush.bf16.msra.mxu3 %v4298_v22  ;;  %v78_v57 = vunpack.c.l.bf16 %v4315_v42  ;;  %v3776_v4 = vld [vmem:[#allocation5 + $0xa0] sm:$0xf]  ;;  %v4007_v5 = vld [vmem:[#allocation5 + $0xc0] sm:$0xf0]  ;;  %v4339_v9 = vor.u32 %v4013_v58, %v3822_v61  ;;  %v3778_v13 = vld [vmem:[#allocation5 + $0xc4] sm:$0xf0] }
  0x2d   :  { %v4003_v6 = vld [vmem:[#allocation5 + $0xa4] sm:$0xf]  ;;  %v3784_v14 = vld [vmem:[#allocation5 + $0xa8] sm:$0xf]  ;;  %v4008_v19 = vld [vmem:[#allocation5 + $0xc8] sm:$0xf0]  ;;  %v4348_v28 = vor.u32 %v4007_v5, %v3776_v4 }
  0x2e   :  { %478 = vmatpush.bf16.msrb.mxu0 %v4300_v23  ;;  %v4330_v63 = vsub.f32 %v76_v40, %v78_v57  ;;  %v4004_v20 = vld [vmem:[#allocation5 + $0xac] sm:$0xf]  ;;  %v3786_v27 = vld [vmem:[#allocation5 + $0xcc] sm:$0xf0]  ;;  %v4352_v30 = vor.u32 %v4003_v6, %v3778_v13  ;;  %v4354_v32 = vor.u32 %v4008_v19, %v3784_v14  ;;  %v3740_v35 = vld [vmem:[#allocation5 + $0x58] sm:$0xf] }
  0x2f   :  { %491 = vmatpush.bf16.msrb.mxu1 %v4302_v24  ;;  %v3998_v36 = vld [vmem:[#allocation5 + $0x78] sm:$0xf0]  ;;  %v4359_v39 = vor.u32 %v4004_v20, %v3786_v27  ;;  %v3742_v40 = vld [vmem:[#allocation5 + $0x7c] sm:$0xf0]  ;;  %v3999_v49 = vld [vmem:[#allocation5 + $0x80] sm:$0xf0] }
  0x30   :  { %504 = vmatpush.bf16.msrb.mxu2 %v4304_v26  ;;  %517 = vmatpush.bf16.msrb.mxu3 %v4307_v31  ;;  %v4343_v11 = vpack.c.bf16 %v4330_v63, %v4330_v63  ;;  %v3994_v37 = vld [vmem:[#allocation5 + $0x5c] sm:$0xf]  ;;  %v3748_v48 = vld [vmem:[#allocation5 + $0x60] sm:$0xf]  ;;  %v3995_v51 = vld [vmem:[#allocation5 + $0x64] sm:$0xf]  ;;  %v4366_v54 = vor.u32 %v3998_v36, %v3740_v35 }
  0x31   :  { %v3750_v53 = vld [vmem:[#allocation5 + $0x84] sm:$0xf0]  ;;  %v3704_v55 = vld [vmem:[#allocation5 + $0x10] sm:$0xf]  ;;  %v4370_v57 = vor.u32 %v3994_v37, %v3742_v40  ;;  %v4372_v58 = vor.u32 %v3999_v49, %v3748_v48  ;;  %v3989_v61 = vld [vmem:[#allocation5 + $0x30] sm:$0xf0] }
  0x32   :  { %479 = vmatpush.bf16.msrb.mxu0 %v4313_v41  ;;  %3903 = vmatmul.msk.bf16.vlgmr.msra.gmra.mxu1 %vm420_vm0, %v4343_v11  ;;  %v3985_v4 = vld [vmem:[#allocation5 + $0x14] sm:$0xf]  ;;  %v3706_v5 = vld [vmem:[#allocation5 + $0x34] sm:$0xf0]  ;;  %v4375_v6 = vor.u32 %v3995_v51, %v3750_v53  ;;  %v3990_v14 = vld [vmem:[#allocation5 + $0x38] sm:$0xf0]  ;;  %v4378_v36 = vor.u32 %v3989_v61, %v3704_v55 }
  0x33   :  { %492 = vmatpush.bf16.msrb.mxu1 %v4319_v43  ;;  %3904 = vmatmul.msk.bf16.vlgmr.msra.gmra.mxu2 %vm420_vm0, %v4343_v11  ;;  %v3712_v13 = vld [vmem:[#allocation5 + $0x18] sm:$0xf]  ;;  %v3986_v19 = vld [vmem:[#allocation5 + $0x1c] sm:$0xf]  ;;  %v3714_v20 = vld [vmem:[#allocation5 + $0x3c] sm:$0xf0]  ;;  %v4382_v37 = vor.u32 %v3985_v4, %v3706_v5 }
  0x34   :  { %505 = vmatpush.bf16.msrb.mxu2 %v4321_v47  ;;  %518 = vmatpush.bf16.msrb.mxu3 %v4324_v52  ;;  %v3900_v27 = vld [vmem:[#allocation5 + $0x188] sm:$0xf]  ;;  %v4036_v35 = vld [vmem:[#allocation5 + $0x1a8] sm:$0xf0]  ;;  %v4384_v40 = vor.u32 %v3990_v14, %v3712_v13  ;;  %v4387_v48 = vor.u32 %v3986_v19, %v3714_v20  ;;  %v3864_v51 = vld [vmem:[#allocation5 + $0x140] sm:$0xf] }
  0x35   :  { %3905 = vmatmul.msk.bf16.vlgmr.msra.gmra.mxu3 %vm420_vm0, %v4343_v11  ;;  %3902 = vmatmul.msk.bf16.vlgmr.msra.gmra.mxu0 %vm420_vm0, %v4343_v11  ;;  %v4389_v49 = vor.u32 %v4036_v35, %v3900_v27  ;;  %v4027_v53 = vld [vmem:[#allocation5 + $0x160] sm:$0xf0]  ;;  %v3828_v61 = vld [vmem:[#allocation5 + $0xf8] sm:$0xf]  ;;  %v4018_v4 = vld [vmem:[#allocation5 + $0x118] sm:$0xf0] }
  0x36   :  { %480 = vmatpush.bf16.msrb.mxu0 %v4328_v62  ;;  %v4396_v55 = vor.u32 %v4027_v53, %v3864_v51  ;;  %v4406_v5 = vor.u32 %v4018_v4, %v3828_v61  ;;  %v3792_v13 = vld [vmem:[#allocation5 + $0xb0] sm:$0xf]  ;;  %v4009_v14 = vld [vmem:[#allocation5 + $0xd0] sm:$0xf0]  ;;  %v3756_v20 = vld [vmem:[#allocation5 + $0x68] sm:$0xf]  ;;  %v81_v4 = vunpack.c.l.bf16 %v4343_v11 }
  0x37   :  { %493 = vmatpush.bf16.msrb.mxu1 %v4334_v1  ;;  %v4416_v19 = vor.u32 %v4009_v14, %v3792_v13  ;;  %v4000_v27 = vld [vmem:[#allocation5 + $0x88] sm:$0xf0]  ;;  %v3720_v51 = vld [vmem:[#allocation5 + $0x20] sm:$0xf]  ;;  %v3991_v53 = vld [vmem:[#allocation5 + $0x40] sm:$0xf0] }
  0x38   :  { %506 = vmatpush.bf16.msrb.mxu2 %v4336_v2  ;;  %519 = vmatpush.bf16.msrb.mxu3 %v4339_v9  ;;  %v4422_v35 = vor.u32 %v4000_v27, %v3756_v20  ;;  %v4428_v61 = vor.u32 %v3991_v53, %v3720_v51  ;;  %v82_v13 = vsub.f32 %v4330_v63, %v81_v4  ;;  %s3672_s3 = sshll.u32 %s4194_s2, 4  ;;  %s3674_s11 = sshll.u32 %s5962_s4, 4  ;;  %s3673_s3 = int_to_ptr.vmem [resolvable:$true] %s3672_s3  ;;  %s3675_s11 = int_to_ptr.hbm [resolvable:$true] %s3674_s11 }
  0x3a   :  { %481 = vmatpush.bf16.msrb.mxu0 %v4348_v28 }
  0x3b   :  { %494 = vmatpush.bf16.msrb.mxu1 %v4352_v30 }
  0x3c   :  { %507 = vmatpush.bf16.msrb.mxu2 %v4354_v32  ;;  %520 = vmatpush.bf16.msrb.mxu3 %v4359_v39 }
  0x3e   :  { %482 = vmatpush.bf16.msrb.mxu0 %v4366_v54 }
  0x3f   :  { %495 = vmatpush.bf16.msrb.mxu1 %v4370_v57 }
  0x40   :  { %508 = vmatpush.bf16.msrb.mxu2 %v4372_v58  ;;  %521 = vmatpush.bf16.msrb.mxu3 %v4375_v6 }
  0x42   :  { %483 = vmatpush.bf16.msrb.mxu0 %v4378_v36 }
  0x43   :  { %496 = vmatpush.bf16.msrb.mxu1 %v4382_v37 }
  0x44   :  { %509 = vmatpush.bf16.msrb.mxu2 %v4384_v40  ;;  %522 = vmatpush.bf16.msrb.mxu3 %v4387_v48 }
  0x45   :  { %3906 = vmatmul.msk.bf16.vlgmr.msrb.gmra.mxu0 %vm420_vm0, %v4343_v11 }
  0x46   :  { %530 = vmatpush.bf16.msra.mxu0 %v4389_v49  ;;  %3907 = vmatmul.msk.bf16.vlgmr.msrb.gmra.mxu1 %vm420_vm0, %v4343_v11 }
  0x47   :  { %546 = vmatpush.bf16.msra.mxu1 %v4232_v3  ;;  %3908 = vmatmul.msk.bf16.vlgmr.msrb.gmra.mxu2 %vm420_vm0, %v4343_v11 }
  0x48   :  { %559 = vmatpush.bf16.msra.mxu2 %v4234_v7  ;;  %572 = vmatpush.bf16.msra.mxu3 %v4236_v8 }
  0x49   :  { %3909 = vmatmul.msk.bf16.vlgmr.msrb.gmra.mxu3 %vm420_vm0, %v4343_v11 }
  0x4a   :  { %531 = vmatpush.bf16.msra.mxu0 %v4396_v55 }
  0x4b   :  { %547 = vmatpush.bf16.msra.mxu1 %v4243_v16 }
  0x4c   :  { %560 = vmatpush.bf16.msra.mxu2 %v4245_v17  ;;  %573 = vmatpush.bf16.msra.mxu3 %v4248_v21 }
  0x4e   :  { %532 = vmatpush.bf16.msra.mxu0 %v4406_v5 }
  0x4f   :  { %548 = vmatpush.bf16.msra.mxu1 %v4253_v29 }
  0x50   :  { %561 = vmatpush.bf16.msra.mxu2 %v4257_v33  ;;  %574 = vmatpush.bf16.msra.mxu3 %v4259_v34 }
  0x52   :  { %533 = vmatpush.bf16.msra.mxu0 %v4416_v19 }
  0x53   :  { %549 = vmatpush.bf16.msra.mxu1 %v4265_v44 }
  0x54   :  { %562 = vmatpush.bf16.msra.mxu2 %v4269_v45  ;;  %575 = vmatpush.bf16.msra.mxu3 %v4271_v46 }
  0x56   :  { %534 = vmatpush.bf16.msra.mxu0 %v4422_v35 }
  0x57   :  { %550 = vmatpush.bf16.msra.mxu1 %v4277_v56 }
  0x58   :  { %563 = vmatpush.bf16.msra.mxu2 %v4281_v59  ;;  %576 = vmatpush.bf16.msra.mxu3 %v4283_v60 }
  0x5a   :  { %535 = vmatpush.bf16.msra.mxu0 %v4428_v61 }
  0x5b   :  { %551 = vmatpush.bf16.msra.mxu1 %v4289_v10 }
  0x5c   :  { %564 = vmatpush.bf16.msra.mxu2 %v4293_v15  ;;  %577 = vmatpush.bf16.msra.mxu3 %v4295_v18 }
  0x5d   :  { %3910 = vmatmul.msk.bf16.vlgmr.msra.gmra.mxu0 %vm420_vm0, %v4343_v11 }
  0x5e   :  { %585 = vmatpush.bf16.msrb.mxu0 %v4239_v12  ;;  %3911 = vmatmul.msk.bf16.vlgmr.msra.gmra.mxu1 %vm420_vm0, %v4315_v42 }
  0x5f   :  { %598 = vmatpush.bf16.msrb.mxu1 %v4300_v23  ;;  %3912 = vmatmul.msk.bf16.vlgmr.msra.gmra.mxu2 %vm420_vm0, %v4315_v42 }
  0x60   :  { %611 = vmatpush.bf16.msrb.mxu2 %v4302_v24  ;;  %624 = vmatpush.bf16.msrb.mxu3 %v4304_v26 }
  0x61   :  { %3913 = vmatmul.msk.bf16.vlgmr.msra.gmra.mxu3 %vm420_vm0, %v4315_v42 }
  0x62   :  { %586 = vmatpush.bf16.msrb.mxu0 %v4250_v25 }
  0x63   :  { %599 = vmatpush.bf16.msrb.mxu1 %v4313_v41 }
  0x64   :  { %612 = vmatpush.bf16.msrb.mxu2 %v4319_v43  ;;  %625 = vmatpush.bf16.msrb.mxu3 %v4321_v47 }
  0x66   :  { %587 = vmatpush.bf16.msrb.mxu0 %v4262_v38 }
  0x67   :  { %600 = vmatpush.bf16.msrb.mxu1 %v4328_v62 }
  0x68   :  { %613 = vmatpush.bf16.msrb.mxu2 %v4334_v1  ;;  %626 = vmatpush.bf16.msrb.mxu3 %v4336_v2 }
  0x6a   :  { %588 = vmatpush.bf16.msrb.mxu0 %v4274_v50 }
  0x6b   :  { %601 = vmatpush.bf16.msrb.mxu1 %v4348_v28 }
  0x6c   :  { %614 = vmatpush.bf16.msrb.mxu2 %v4352_v30  ;;  %627 = vmatpush.bf16.msrb.mxu3 %v4354_v32 }
  0x6e   :  { %589 = vmatpush.bf16.msrb.mxu0 %v4286_v0 }
  0x6f   :  { %602 = vmatpush.bf16.msrb.mxu1 %v4366_v54 }
  0x70   :  { %615 = vmatpush.bf16.msrb.mxu2 %v4370_v57  ;;  %628 = vmatpush.bf16.msrb.mxu3 %v4372_v58 }
  0x72   :  { %590 = vmatpush.bf16.msrb.mxu0 %v4298_v22 }
  0x73   :  { %603 = vmatpush.bf16.msrb.mxu1 %v4378_v36 }
  0x74   :  { %616 = vmatpush.bf16.msrb.mxu2 %v4382_v37  ;;  %629 = vmatpush.bf16.msrb.mxu3 %v4384_v40 }
  0x75   :  { %3914 = vmatmul.msk.bf16.vlgmr.msrb.gmra.mxu0 %vm420_vm0, %v4315_v42 }
  0x76   :  { %637 = vmatpush.bf16.msra.mxu0 %v4307_v31  ;;  %3915 = vmatmul.msk.bf16.vlgmr.msrb.gmra.mxu1 %vm420_vm0, %v4315_v42 }
  0x77   :  { %650 = vmatpush.bf16.msra.mxu1 %v4389_v49  ;;  %3916 = vmatmul.msk.bf16.vlgmr.msrb.gmra.mxu2 %vm420_vm0, %v4315_v42 }
  0x78   :  { %666 = vmatpush.bf16.msra.mxu2 %v4232_v3  ;;  %679 = vmatpush.bf16.msra.mxu3 %v4234_v7  ;;  %v83_v3 = vpack.c.bf16 %v82_v13, %v82_v13 }
  0x79   :  { %3917 = vmatmul.msk.bf16.vlgmr.msrb.gmra.mxu3 %vm420_vm0, %v4315_v42 }
  0x7a   :  { %638 = vmatpush.bf16.msra.mxu0 %v4324_v52 }
  0x7b   :  { %651 = vmatpush.bf16.msra.mxu1 %v4396_v55 }
  0x7c   :  { %667 = vmatpush.bf16.msra.mxu2 %v4243_v16  ;;  %680 = vmatpush.bf16.msra.mxu3 %v4245_v17 }
  0x7e   :  { %639 = vmatpush.bf16.msra.mxu0 %v4339_v9 }
  0x7f   :  { %652 = vmatpush.bf16.msra.mxu1 %v4406_v5 }
  0x80   :  { %668 = vmatpush.bf16.msra.mxu2 %v4253_v29  ;;  %681 = vmatpush.bf16.msra.mxu3 %v4257_v33 }
  0x82   :  { %640 = vmatpush.bf16.msra.mxu0 %v4359_v39 }
  0x83   :  { %653 = vmatpush.bf16.msra.mxu1 %v4416_v19 }
  0x84   :  { %669 = vmatpush.bf16.msra.mxu2 %v4265_v44  ;;  %682 = vmatpush.bf16.msra.mxu3 %v4269_v45 }
  0x86   :  { %641 = vmatpush.bf16.msra.mxu0 %v4375_v6 }
  0x87   :  { %654 = vmatpush.bf16.msra.mxu1 %v4422_v35 }
  0x88   :  { %670 = vmatpush.bf16.msra.mxu2 %v4277_v56  ;;  %683 = vmatpush.bf16.msra.mxu3 %v4281_v59 }
  0x8a   :  { %642 = vmatpush.bf16.msra.mxu0 %v4387_v48 }
  0x8b   :  { %655 = vmatpush.bf16.msra.mxu1 %v4428_v61 }
  0x8c   :  { %671 = vmatpush.bf16.msra.mxu2 %v4289_v10  ;;  %684 = vmatpush.bf16.msra.mxu3 %v4293_v15 }
  0x8d   :  { %3918 = vmatmul.msk.bf16.vlgmr.msra.gmra.mxu0 %vm420_vm0, %v4315_v42 }
  0x8e   :  { %692 = vmatpush.bf16.msrb.mxu0 %v4236_v8  ;;  %3919 = vmatmul.msk.bf16.vlgmr.msra.gmra.mxu1 %vm420_vm0, %v4315_v42 }
  0x8f   :  { %705 = vmatpush.bf16.msrb.mxu1 %v4239_v12  ;;  %3920 = vmatmul.msk.bf16.vlgmr.msra.gmra.mxu2 %vm420_vm0, %v83_v3 }
  0x90   :  { %718 = vmatpush.bf16.msrb.mxu2 %v4300_v23  ;;  %731 = vmatpush.bf16.msrb.mxu3 %v4302_v24 }
  0x91   :  { %3921 = vmatmul.msk.bf16.vlgmr.msra.gmra.mxu3 %vm420_vm0, %v83_v3 }
  0x92   :  { %693 = vmatpush.bf16.msrb.mxu0 %v4248_v21 }
  0x93   :  { %706 = vmatpush.bf16.msrb.mxu1 %v4250_v25 }
  0x94   :  { %719 = vmatpush.bf16.msrb.mxu2 %v4313_v41  ;;  %732 = vmatpush.bf16.msrb.mxu3 %v4319_v43 }
  0x96   :  { %694 = vmatpush.bf16.msrb.mxu0 %v4259_v34 }
  0x97   :  { %707 = vmatpush.bf16.msrb.mxu1 %v4262_v38 }
  0x98   :  { %720 = vmatpush.bf16.msrb.mxu2 %v4328_v62  ;;  %733 = vmatpush.bf16.msrb.mxu3 %v4334_v1 }
  0x9a   :  { %695 = vmatpush.bf16.msrb.mxu0 %v4271_v46 }
  0x9b   :  { %708 = vmatpush.bf16.msrb.mxu1 %v4274_v50 }
  0x9c   :  { %721 = vmatpush.bf16.msrb.mxu2 %v4348_v28  ;;  %734 = vmatpush.bf16.msrb.mxu3 %v4352_v30 }
  0x9e   :  { %696 = vmatpush.bf16.msrb.mxu0 %v4283_v60 }
  0x9f   :  { %709 = vmatpush.bf16.msrb.mxu1 %v4286_v0 }
  0xa0   :  { %722 = vmatpush.bf16.msrb.mxu2 %v4366_v54  ;;  %735 = vmatpush.bf16.msrb.mxu3 %v4370_v57  ;;  %v4570_v57 = vld [vmem:[#allocation7] sm:$0xff] }
  0xa2   :  { %697 = vmatpush.bf16.msrb.mxu0 %v4295_v18 }
  0xa3   :  { %710 = vmatpush.bf16.msrb.mxu1 %v4298_v22 }
  0xa4   :  { %723 = vmatpush.bf16.msrb.mxu2 %v4378_v36  ;;  %736 = vmatpush.bf16.msrb.mxu3 %v4382_v37  ;;  %v795_v36 = vperm.slane %v4570_v57, 1 }
  0xa5   :  { %3922 = vmatmul.msk.bf16.vlgmr.msrb.gmra.mxu0 %vm420_vm0, %v83_v3 }
  0xa6   :  { %744 = vmatpush.bf16.msra.mxu0 %v4304_v26  ;;  %3923 = vmatmul.msk.bf16.vlgmr.msrb.gmra.mxu1 %vm420_vm0, %v83_v3 }
  0xa7   :  { %757 = vmatpush.bf16.msra.mxu1 %v4307_v31  ;;  %3924 = vmatmul.msk.bf16.vlgmr.msrb.gmra.mxu2 %vm420_vm0, %v83_v3 }
  0xa8   :  { %770 = vmatpush.bf16.msra.mxu2 %v4389_v49  ;;  %3925 = vmatmul.msk.bf16.vlgmr.msrb.gmra.mxu3 %vm420_vm0, %v83_v3 }
  0xaa   :  { %745 = vmatpush.bf16.msra.mxu0 %v4321_v47 }
  0xab   :  { %758 = vmatpush.bf16.msra.mxu1 %v4324_v52 }
  0xac   :  { %771 = vmatpush.bf16.msra.mxu2 %v4396_v55 }
  0xae   :  { %746 = vmatpush.bf16.msra.mxu0 %v4336_v2 }
  0xaf   :  { %759 = vmatpush.bf16.msra.mxu1 %v4339_v9  ;;  %v446_v7 = vpop.f32.mrf.mxu1 }
  0xb0   :  { %772 = vmatpush.bf16.msra.mxu2 %v4406_v5 }
  0xb2   :  { %747 = vmatpush.bf16.msra.mxu0 %v4354_v32  ;;  %v433_v8 = vpop.f32.mrf.mxu0 }
  0xb3   :  { %760 = vmatpush.bf16.msra.mxu1 %v4359_v39 }
  0xb4   :  { %773 = vmatpush.bf16.msra.mxu2 %v4416_v19 }
  0xb6   :  { %748 = vmatpush.bf16.msra.mxu0 %v4372_v58  ;;  %v459_v12 = vpop.f32.mrf.mxu2  ;;  %v794_v58 = vperm.slane %v4570_v57, 0 }
  0xb7   :  { %761 = vmatpush.bf16.msra.mxu1 %v4375_v6  ;;  %v448_v16 = vpop.f32.mrf.mxu1 }
  0xb8   :  { %774 = vmatpush.bf16.msra.mxu2 %v4422_v35  ;;  %v472_v17 = vpop.f32.mrf.mxu3 }
  0xba   :  { %749 = vmatpush.bf16.msra.mxu0 %v4384_v40  ;;  %v435_v21 = vpop.f32.mrf.mxu0 }
  0xbb   :  { %762 = vmatpush.bf16.msra.mxu1 %v4387_v48 }
  0xbc   :  { %775 = vmatpush.bf16.msra.mxu2 %v4428_v61 }
  0xbd   :  { %3926 = vmatmul.msk.bf16.vlgmr.msra.gmra.mxu0 %vm420_vm0, %v83_v3 }
  0xbe   :  { %3927 = vmatmul.msk.bf16.vlgmr.msra.gmra.mxu1 %vm420_vm0, %v83_v3  ;;  %v461_v25 = vpop.f32.mrf.mxu2 }
  0xbf   :  { %3928 = vmatmul.msk.bf16.vlgmr.msra.gmra.mxu2 %vm420_vm0, %v83_v3 }
  0xc0   :  { %v474_v33 = vpop.f32.mrf.mxu3 }
  0xc2   :  { %v485_v34 = vpop.f32.mrf.mxu0 }
  0xc3   :  { %v498_v29 = vpop.f32.mrf.mxu1 }
  0xca   :  { %v511_v38 = vpop.f32.mrf.mxu2  ;;  %v487_v46 = vpop.f32.mrf.mxu0 }
  0xcb   :  { %v500_v44 = vpop.f32.mrf.mxu1 }
  0xcc   :  { %v524_v45 = vpop.f32.mrf.mxu3 }
  0xd2   :  { %v513_v50 = vpop.f32.mrf.mxu2 }
  0xd4   :  { %v526_v56 = vpop.f32.mrf.mxu3 }
  0xda   :  { %v537_v0 = vpop.f32.mrf.mxu0 }
  0xdb   :  { %v553_v59 = vpop.f32.mrf.mxu1 }
  0xdc   :  { %v554_v60 = vadd.f32 %v553_v59, %v433_v8 }
  0xe2   :  { %v566_v10 = vpop.f32.mrf.mxu2  ;;  %v539_v24 = vpop.f32.mrf.mxu0 }
  0xe3   :  { %v567_v18 = vadd.f32 %v566_v10, %v446_v7  ;;  %v555_v23 = vpop.f32.mrf.mxu1  ;;  %v5972_v10 = vmov 2475754826  }
  0xe4   :  { %v579_v15 = vpop.f32.mrf.mxu3  ;;  %v5970_v23 = vmov 2131351028  }
  0xe5   :  { %v580_v22 = vadd.f32 %v579_v15, %v459_v12 }
  0xea   :  { %v568_v26 = vpop.f32.mrf.mxu2 }
  0xec   :  { %v581_v31 = vpop.f32.mrf.mxu3 }
  0xed   :  { %v5974_v31 = vmov 2102212464  }
  0xf2   :  { %v592_v41 = vpop.f32.mrf.mxu0 }
  0xf3   :  { %v4558_v42 = vadd.f32 %v592_v41, %v472_v17  ;;  %v605_v43 = vpop.f32.mrf.mxu1 }
  0xf4   :  { %v4560_v47 = vadd.f32 %v605_v43, %v485_v34 }
  0xfa   :  { %v618_v52 = vpop.f32.mrf.mxu2  ;;  %v594_v1 = vpop.f32.mrf.mxu0 }
  0xfb   :  { %v4562_v62 = vadd.f32 %v618_v52, %v498_v29  ;;  %v607_v9 = vpop.f32.mrf.mxu1  ;;  %v5978_v52 = vmov 920167782  }
  0xfc   :  { %v631_v63 = vpop.f32.mrf.mxu3  ;;  %v5966_v9 = vmov 1326507024  }
  0xfd   :  { %v4564_v2 = vadd.f32 %v631_v63, %v511_v38 }
 0x102   :  { %v620_v11 = vpop.f32.mrf.mxu2 }
 0x104   :  { %v633_v28 = vpop.f32.mrf.mxu3 }
 0x10a   :  { %v644_v30 = vpop.f32.mrf.mxu0 }
 0x10b   :  { %v4566_v32 = vadd.f32 %v644_v30, %v524_v45  ;;  %v657_v39 = vpop.f32.mrf.mxu1 }
 0x10c   :  { %v4568_v54 = vadd.f32 %v657_v39, %v537_v0 }
 0x112   :  { %v673_v6 = vpop.f32.mrf.mxu2  ;;  %v646_v48 = vpop.f32.mrf.mxu0 }
 0x113   :  { %v781_v37 = vadd.f32 %v673_v6, %v554_v60  ;;  %v659_v55 = vpop.f32.mrf.mxu1  ;;  %v5968_v60 = vmov 683565275  }
 0x114   :  { %v686_v40 = vpop.f32.mrf.mxu3 }
 0x115   :  { %v782_v49 = vadd.f32 %v686_v40, %v567_v18  ;;  %v4574_v5 = vmul.f32 %v794_v58, %v781_v37 }
 0x117   :  { %5992 = vst [vmem:[#allocation15_spill] sm:$0xff] %v4574_v5  ;;  %v4576_v14 = vmul.f32 %v795_v36, %v782_v49  ;;  %v5964_v19 = vand.u32 2147483647, %v4574_v5  ;;  %v828_v20 = vand.u32 2139095040, %v4574_v5 }
 0x119   :  { %v980_v27 = vand.u32 2147483647, %v4576_v14  ;;  %v983_v35 = vand.u32 2139095040, %v4576_v14  ;;  %v829_v51 = vshrl.u32 %v828_v20, 23  ;;  %v832_v53 = vand.u32 8388607, %v5964_v19 }
 0x11a   :  { %v675_v4 = vpop.f32.mrf.mxu2 }
 0x11b   :  { %v984_v61 = vshrl.u32 %v983_v35, 23  ;;  %v3929_v13 = vadd.s32 4294967169, %v829_v51  ;;  %v833_v3 = vor.u32 8388608, %v832_v53  ;;  %v987_v7 = vand.u32 8388607, %v980_v27 }
 0x11c   :  { %v688_v8 = vpop.f32.mrf.mxu3 }
 0x11d   :  { %v3932_v12 = vadd.s32 4294967169, %v984_v61  ;;  %v835_v16 = vadd.s32 1, %v3929_v13  ;;  %v4586_v21 = vshll.u32 %v833_v3, 8  ;;  %v988_v25 = vor.u32 8388608, %v987_v7 }
 0x11f   :  { %v990_v17 = vadd.s32 1, %v3932_v12  ;;  %vm836_vm1 = vcmp.gt.s32.totalorder %v835_v16, 0  ;;  %v4591_v46 = vand.u32 65535, %v4586_v21  ;;  %v4595_v56 = vshll.u32 %v988_v25, 8 }
 0x120   :  { %v837_v29 = vsel %vm836_vm1, %v835_v16, 0  ;;  %v875_v18 = vshrl.u32 %v4586_v21, 16 }
 0x121   :  { %vm991_vm2 = vcmp.gt.s32.totalorder %v990_v17, 0  ;;  %v839_v33 = vand.u32 31, %v837_v29  ;;  %v4597_v59 = vshrl.u32 %v837_v29, 5 }
 0x122   :  { %v992_v34 = vsel %vm991_vm2, %v990_v17, 0  ;;  %v699_v38 = vpop.f32.mrf.mxu0 }
 0x123   :  { %v4588_v44 = vadd.f32 %v699_v38, %v580_v22  ;;  %v840_v45 = vsub.s32 32, %v839_v33  ;;  %v4593_v50 = vand.u32 31, %v992_v34  ;;  %v842_v0 = vshll.u32 %v5968_v60, %v839_v33 }
 0x124   :  { %v845_v15 = vshll.u32 %v5972_v10, %v839_v33  ;;  %v848_v26 = vshll.u32 %v5970_v23, %v839_v33  ;;  %v851_v43 = vshll.u32 %v5974_v31, %v839_v33  ;;  %v854_v1 = vshll.u32 %v5978_v52, %v839_v33 }
 0x125   :  { %v843_v22 = vshrl.u32 %v5972_v10, %v840_v45  ;;  %v846_v24 = vshrl.u32 %v5970_v23, %v840_v45  ;;  %v849_v41 = vshrl.u32 %v5974_v31, %v840_v45  ;;  %v852_v63 = vshrl.u32 %v5978_v52, %v840_v45 }
 0x126   :  { %v855_v11 = vshrl.u32 %v5966_v9, %v840_v45  ;;  %v4611_v58 = vsub.s32 32, %v4593_v50  ;;  %vm857_vm3 = vcmp.lt.s32.totalorder %v4597_v59, 1  ;;  %vm858_vm4 = vcmp.lt.s32.totalorder %v4597_v59, 2 }
 0x127   :  { %v844_v28 = vor.u32 %v843_v22, %v842_v0  ;;  %v847_v30 = vor.u32 %v846_v24, %v845_v15  ;;  %v850_v39 = vor.u32 %v849_v41, %v848_v26  ;;  %v853_v6 = vor.u32 %v852_v63, %v851_v43 }
 0x128   :  { %v856_v36 = vor.u32 %v855_v11, %v854_v1  ;;  %v841_v37 = vshrl.u32 %v5968_v60, %v840_v45  ;;  %vm860_vm5 = vcmp.lt.s32.totalorder %v4597_v59, 4  ;;  %vm859_vm6 = vcmp.lt.s32.totalorder %v4597_v59, 3 }
 0x129   :  { %v865_v40 = vsel %vm857_vm3, %v844_v28, %v847_v30  ;;  %v869_v48 = vsel %vm857_vm3, %v847_v30, %v850_v39  ;;  %v866_v55 = vsel %vm860_vm5, %v853_v6, 920167782  ;;  %v997_v35 = vshll.u32 %v5968_v60, %v4593_v50 }
 0x12a   :  { %v701_v49 = vpop.f32.mrf.mxu0  ;;  %v870_v20 = vsel %vm860_vm5, %v856_v36, 1326507024  ;;  %v862_v51 = vsel %vm860_vm5, %v850_v39, 2102212464  ;;  %v867_v53 = vsel %vm859_vm6, %v850_v39, %v866_v55  ;;  %v998_v4 = vshrl.u32 %v5972_v10, %v4611_v58 }
 0x12b   :  { %v871_v61 = vsel %vm859_vm6, %v853_v6, %v870_v20  ;;  %v868_v13 = vsel %vm858_vm4, %v865_v40, %v867_v53  ;;  %v1000_v7 = vshll.u32 %v5972_v10, %v4593_v50  ;;  %v1001_v8 = vshrl.u32 %v5970_v23, %v4611_v58 }
 0x12c   :  { %v872_v3 = vsel %vm858_vm4, %v869_v48, %v871_v61  ;;  %v898_v17 = vand.u32 65535, %v868_v13  ;;  %v899_v25 = vshrl.u32 %v868_v13, 16  ;;  %v861_v29 = vsel %vm857_vm3, %v841_v37, %v844_v28 }
 0x12d   :  { %v876_v12 = vand.u32 65535, %v872_v3  ;;  %v877_v16 = vshrl.u32 %v872_v3, 16  ;;  %v863_v33 = vsel %vm859_vm6, %v847_v30, %v862_v51  ;;  %v4642_v38 = vshrl.u32 %v992_v34, 5  ;;  %v4661_v51 = vpop.f32.mrf.mxu1 }
 0x12e   :  { %v4644_v45 = vor.u32 %v998_v4, %v997_v35  ;;  %v4647_v22 = vor.u32 %v1001_v8, %v1000_v7  ;;  %v1004_v24 = vshrl.u32 %v5974_v31, %v4611_v58  ;;  %v901_v41 = vmul.u32 %v899_v25, %v4591_v46 }
 0x12f   :  { %v879_v0 = vmul.u32 %v877_v16, %v4591_v46  ;;  %v880_v15 = vmul.u32 %v876_v12, %v875_v18  ;;  %v878_v26 = vmul.u32 %v876_v12, %v4591_v46  ;;  %v902_v43 = vmul.u32 %v898_v17, %v875_v18 }
 0x130   :  { %v1003_v63 = vshll.u32 %v5970_v23, %v4593_v50  ;;  %v881_v34 = vmul.u32 %v877_v16, %v875_v18  ;;  %v900_v11 = vmul.u32 %v898_v17, %v4591_v46  ;;  %v903_v28 = vmul.u32 %v899_v25, %v875_v18 }
 0x131   :  { %v882_v1 = vshll.u32 %v879_v0, 16  ;;  %v883_v30 = vshrl.u32 %v879_v0, 16  ;;  %v884_v39 = vshll.u32 %v880_v15, 16  ;;  %v885_v6 = vshrl.u32 %v880_v15, 16 }
 0x132   :  { %v904_v36 = vshll.u32 %v901_v41, 16  ;;  %v906_v40 = vshll.u32 %v902_v43, 16  ;;  %v4656_v48 = vor.u32 %v1004_v24, %v1003_v63  ;;  %v5980_v49 = vmov 0  }
 0x133   :  { %vm886_vm7 = vc.u32 %v878_v26, %v882_v1  ;;  %v888_v37 = vadd.s32 %v882_v1, %v878_v26  ;;  %v1007_v35 = vshrl.u32 %v5978_v52, %v4611_v58  ;;  %v1006_v53 = vshll.u32 %v5974_v31, %v4593_v50 }
 0x134   :  { %v887_v55 = vsel %vm886_vm7, 1, %v5980_v49  ;;  %vm908_vm8 = vc.u32 %v900_v11, %v904_v36  ;;  %v910_v20 = vadd.s32 %v904_v36, %v900_v11  ;;  %v1009_v13 = vshll.u32 %v5978_v52, %v4593_v50 }
 0x135   :  { %v889_v46 = vadd.s32 %v887_v55, %v881_v34  ;;  %vm890_vm9 = vc.u32 %v888_v37, %v884_v39  ;;  %v909_v18 = vsel %vm908_vm8, 1, %v5980_v49  ;;  %v1008_v8 = vor.u32 %v1007_v35, %v1006_v53  ;;  %v714_v39 = vpop.f32.mrf.mxu1 }
 0x136   :  { %v891_v61 = vsel %vm890_vm9, 1, %v5980_v49  ;;  %v911_v4 = vadd.s32 %v909_v18, %v903_v28  ;;  %vm912_vm10 = vc.u32 %v910_v20, %v906_v40  ;;  %v1010_v12 = vshrl.u32 %v5966_v9, %v4611_v58 }
 0x137   :  { %v893_v3 = vadd.s32 %v891_v61, %v889_v46  ;;  %v913_v7 = vsel %vm912_vm10, 1, %v5980_v49  ;;  %v905_v16 = vshrl.u32 %v901_v41, 16  ;;  %v907_v17 = vshrl.u32 %v902_v43, 16 }
 0x138   :  { %v4672_v25 = vadd.s32 %v910_v20, %v906_v40  ;;  %v915_v0 = vadd.s32 %v913_v7, %v911_v4  ;;  %v1011_v24 = vor.u32 %v1010_v12, %v1009_v13  ;;  %vm1012_vm11 = vcmp.lt.s32.totalorder %v4642_v38, 1 }
 0x139   :  { %v894_v15 = vadd.s32 %v893_v3, %v883_v30  ;;  %vm1015_vm12 = vcmp.lt.s32.totalorder %v4642_v38, 4  ;;  %vm1014_vm13 = vcmp.lt.s32.totalorder %v4642_v38, 3  ;;  %v1020_v50 = vsel %vm1012_vm11, %v4644_v45, %v4647_v22 }
 0x13a   :  { %v916_v26 = vadd.s32 %v915_v0, %v905_v16  ;;  %v1021_v41 = vsel %vm1015_vm12, %v1008_v8, 920167782  ;;  %vm1013_vm14 = vcmp.lt.s32.totalorder %v4642_v38, 2  ;;  %v1024_v34 = vsel %vm1012_vm11, %v4647_v22, %v4656_v48 }
 0x13b   :  { %v4683_v43 = vadd.s32 %v894_v15, %v885_v6  ;;  %v1022_v63 = vsel %vm1014_vm13, %v4656_v48, %v1021_v41  ;;  %v864_v1 = vsel %vm858_vm4, %v861_v29, %v863_v33  ;;  %v1025_v30 = vsel %vm1015_vm12, %v1011_v24, 1326507024 }
 0x13c   :  { %v917_v11 = vadd.s32 %v916_v26, %v907_v17  ;;  %v1023_v28 = vsel %vm1013_vm14, %v1020_v50, %v1022_v63  ;;  %v1026_v6 = vsel %vm1014_vm13, %v1008_v8, %v1025_v30  ;;  %v1029_v36 = vand.u32 65535, %v4595_v56 }
 0x13d   :  { %vm920_vm15 = vc.u32 %v4683_v43, %v4672_v25  ;;  %v1053_v37 = vand.u32 65535, %v1023_v28  ;;  %v1027_v59 = vsel %vm1013_vm14, %v1024_v34, %v1026_v6  ;;  %v1030_v29 = vshrl.u32 %v4595_v56, 16 }
 0x13e   :  { %v921_v40 = vadd.s32 1, %v917_v11  ;;  %v1054_v33 = vshrl.u32 %v1023_v28, 16  ;;  %v918_v55 = vmul.u32 %v4586_v21, %v864_v1  ;;  %v1031_v20 = vand.u32 65535, %v1027_v59 }
 0x13f   :  { %v1032_v35 = vshrl.u32 %v1027_v59, 16  ;;  %v1057_v53 = vmul.u32 %v1053_v37, %v1030_v29  ;;  %v996_v3 = vshrl.u32 %v5968_v60, %v4611_v58  ;;  %v1055_v7 = vmul.u32 %v1053_v37, %v1029_v36 }
 0x140   :  { %v922_v46 = vsel %vm920_vm15, %v921_v40, %v917_v11  ;;  %v1056_v18 = vmul.u32 %v1054_v33, %v1029_v36  ;;  %v1035_v13 = vmul.u32 %v1031_v20, %v1030_v29  ;;  %v796_v12 = vperm.slane %v4570_v57, 2 }
 0x141   :  { %v923_v61 = vadd.s32 %v922_v46, %v918_v55  ;;  %v1034_v4 = vmul.u32 %v1032_v35, %v1029_v36  ;;  %v1033_v17 = vmul.u32 %v1031_v20, %v1029_v36  ;;  %v1058_v15 = vmul.u32 %v1054_v33, %v1030_v29 }
 0x142   :  { %v1059_v8 = vshll.u32 %v1056_v18, 16  ;;  %v1036_v21 = vmul.u32 %v1032_v35, %v1030_v29  ;;  %v1061_v24 = vshll.u32 %v1057_v53, 16  ;;  %v1039_v50 = vshll.u32 %v1035_v13, 16 }
 0x143   :  { %v924_v16 = vadd.s32 536870912, %v923_v61  ;;  %v1037_v0 = vshll.u32 %v1034_v4, 16  ;;  %v4714_v1 = vmul.f32 %v796_v12, %v4588_v44  ;;  %v1017_v28 = vsel %vm1015_vm12, %v4656_v48, 2102212464 }
 0x144   :  { %vm1063_vm0 = vc.u32 %v1055_v7, %v1059_v8  ;;  %v1065_v26 = vadd.s32 %v1059_v8, %v1055_v7  ;;  %v1016_v36 = vsel %vm1012_vm11, %v996_v3, %v4644_v45  ;;  %v1018_v44 = vsel %vm1014_vm13, %v4647_v22, %v1017_v28 }
 0x145   :  { %vm1041_vm1 = vc.u32 %v1033_v17, %v1037_v0  ;;  %v1043_v41 = vadd.s32 %v1037_v0, %v1033_v17  ;;  %v1064_v63 = vsel %vm1063_vm0, 1, %v5980_v49  ;;  %v4716_v11 = vshrl.u32 %v924_v16, 30 }
 0x146   :  { %v1042_v34 = vsel %vm1041_vm1, 1, %v5980_v49  ;;  %v1066_v58 = vadd.s32 %v1064_v63, %v1058_v15  ;;  %vm1067_vm2 = vc.u32 %v1065_v26, %v1061_v24  ;;  %v1038_v59 = vshrl.u32 %v1034_v4, 16 }
 0x147   :  { %v1044_v30 = vadd.s32 %v1042_v34, %v1036_v21  ;;  %vm1045_vm3 = vc.u32 %v1043_v41, %v1039_v50  ;;  %v1068_v6 = vsel %vm1067_vm2, 1, %v5980_v49  ;;  %v1060_v29 = vshrl.u32 %v1056_v18, 16 }
 0x148   :  { %v1046_v39 = vsel %vm1045_vm3, 1, %v5980_v49  ;;  %v1070_v40 = vadd.s32 %v1068_v6, %v1066_v58  ;;  %v1138_v48 = vand.u32 2139095040, %v4714_v1  ;;  %v926_v33 = vshll.u32 %v4716_v11, 30 }
 0x149   :  { %v1048_v37 = vadd.s32 %v1046_v39, %v1044_v30  ;;  %v1040_v55 = vshrl.u32 %v1035_v13, 16  ;;  %v1062_v35 = vshrl.u32 %v1057_v53, 16  ;;  %v1019_v45 = vsel %vm1013_vm14, %v1016_v36, %v1018_v44 }
 0x14a   :  { %v1071_v46 = vadd.s32 %v1070_v40, %v1060_v29  ;;  %v1139_v7 = vshrl.u32 %v1138_v48, 23  ;;  %v4735_v3 = vadd.f32 %v4661_v51, %v4558_v42  ;;  %v4739_v22 = vadd.s32 %v1065_v26, %v1061_v24 }
 0x14b   :  { %v1049_v20 = vadd.s32 %v1048_v37, %v1038_v59  ;;  %v4741_v12 = vsub.s32 %v923_v61, %v926_v33  ;;  %v1073_v13 = vmul.u32 %v4595_v56, %v1019_v45  ;;  %v5963_v15 = vand.u32 2147483647, %v4714_v1 }
 0x14c   :  { %v1072_v18 = vadd.s32 %v1071_v46, %v1062_v35  ;;  %v3935_v4 = vadd.s32 4294967169, %v1139_v7 }
 0x14d   :  { %v4737_v8 = vadd.s32 %v1049_v20, %v1040_v55  ;;  %v929_v17 = vsub.s32 0, %v4741_v12  ;;  %vm928_vm6 = vcmp.lt.s32.totalorder %v4741_v12, 0  ;;  %v1142_v50 = vand.u32 8388607, %v5963_v15 }
 0x14e   :  { %v1076_v53 = vadd.s32 1, %v1072_v18  ;;  %v1145_v38 = vadd.s32 1, %v3935_v4 }
 0x14f   :  { %vm1075_vm4 = vc.u32 %v4737_v8, %v4739_v22  ;;  %v930_v21 = vsel %vm928_vm6, %v929_v17, %v4741_v12  ;;  %v1143_v39 = vor.u32 8388608, %v1142_v50 }
 0x150   :  { %v1077_v16 = vsel %vm1075_vm4, %v1076_v53, %v1072_v18  ;;  %vm1146_vm5 = vcmp.gt.s32.totalorder %v1145_v38, 0  ;;  %v931_v41 = vclz %v930_v21  ;;  %vm982_vm4 = vcmp.lt.s32.totalorder %v4576_v14, 0 }
 0x151   :  { %v1078_v42 = vadd.s32 %v1077_v16, %v1073_v13  ;;  %v1147_v51 = vsel %vm1146_vm5, %v1145_v38, 0  ;;  %v4783_v18 = vshll.u32 %v1143_v39, 8  ;;  %v4794_v16 = vpop.f32.mrf.mxu2 }
 0x152   :  { %v1149_v61 = vand.u32 31, %v1147_v51  ;;  %v3930_v36 = vadd.s32 4294967294, %v931_v41  ;;  %v4773_v29 = vshrl.u32 %v1147_v51, 5 }
 0x153   :  { %v1079_v0 = vadd.s32 536870912, %v1078_v42  ;;  %v1184_v50 = vand.u32 65535, %v4783_v18 }
 0x154   :  { %v4752_v26 = vsub.s32 32, %v1149_v61  ;;  %v1152_v37 = vshll.u32 %v5968_v60, %v1149_v61  ;;  %v1155_v40 = vshll.u32 %v5972_v10, %v1149_v61  ;;  %v1161_v44 = vshll.u32 %v5974_v31, %v1149_v61 }
 0x155   :  { %v4750_v24 = vshrl.u32 %v1079_v0, 30  ;;  %v1158_v48 = vshll.u32 %v5970_v23, %v1149_v61  ;;  %v1164_v45 = vshll.u32 %v5978_v52, %v1149_v61  ;;  %vm3931_vm8 = vcmp.lt.s32.totalorder %v3930_v36, 0 }
 0x156   :  { %v1153_v34 = vshrl.u32 %v5972_v10, %v4752_v26  ;;  %v1156_v58 = vshrl.u32 %v5970_v23, %v4752_v26  ;;  %v1162_v28 = vshrl.u32 %v5978_v52, %v4752_v26  ;;  %v1159_v6 = vshrl.u32 %v5974_v31, %v4752_v26 }
 0x157   :  { %v1081_v56 = vshll.u32 %v4750_v24, 30  ;;  %v1165_v33 = vshrl.u32 %v5966_v9, %v4752_v26  ;;  %vm1167_vm9 = vcmp.lt.s32.totalorder %v4773_v29, 1  ;;  %vm1170_vm10 = vcmp.lt.s32.totalorder %v4773_v29, 4 }
 0x158   :  { %v4778_v20 = vor.u32 %v1153_v34, %v1152_v37  ;;  %v4780_v35 = vor.u32 %v1156_v58, %v1155_v40  ;;  %v1163_v46 = vor.u32 %v1162_v28, %v1161_v44  ;;  %v1160_v7 = vor.u32 %v1159_v6, %v1158_v48 }
 0x159   :  { %v4757_v63 = vsub.s32 %v1078_v42, %v1081_v56  ;;  %v1166_v4 = vor.u32 %v1165_v33, %v1164_v45  ;;  %vm1169_vm11 = vcmp.lt.s32.totalorder %v4773_v29, 3  ;;  %v4798_v42 = vsel %vm3931_vm8, 0, %v3930_v36  ;;  %v727_v48 = vpop.f32.mrf.mxu2 }
 0x15a   :  { %v1175_v13 = vsel %vm1167_vm9, %v4778_v20, %v4780_v35  ;;  %v1176_v38 = vsel %vm1170_vm10, %v1163_v46, 920167782  ;;  %vm1168_vm12 = vcmp.lt.s32.totalorder %v4773_v29, 2  ;;  %v1179_v51 = vsel %vm1167_vm9, %v4780_v35, %v1160_v7 }
 0x15b   :  { %vm1083_vm7 = vcmp.lt.s32.totalorder %v4757_v63, 0  ;;  %v1084_v30 = vsub.s32 0, %v4757_v63  ;;  %v1177_v17 = vsel %vm1169_vm11, %v1160_v7, %v1176_v38  ;;  %v797_v0 = vperm.slane %v4570_v57, 3 }
 0x15c   :  { %v1178_v61 = vsel %vm1168_vm12, %v1175_v13, %v1177_v17  ;;  %v1180_v21 = vsel %vm1170_vm10, %v1166_v4, 1326507024  ;;  %v939_v41 = vsub.s32 4294967266, %v4798_v42  ;;  %v1074_v44 = vadd.s32 %v4739_v22, %v4737_v8 }
 0x15d   :  { %v1085_v59 = vsel %vm1083_vm7, %v1084_v30, %v4757_v63  ;;  %v1181_v56 = vsel %vm1169_vm11, %v1163_v46, %v1180_v21  ;;  %v1208_v58 = vand.u32 65535, %v1178_v61  ;;  %v1209_v28 = vshrl.u32 %v1178_v61, 16 }
 0x15e   :  { %v1086_v55 = vclz %v1085_v59  ;;  %v1182_v34 = vsel %vm1168_vm12, %v1179_v51, %v1181_v56  ;;  %v1185_v30 = vshrl.u32 %v4783_v18, 16  ;;  %v4817_v6 = vmul.f32 %v797_v0, %v4735_v3 }
 0x15f   :  { %v1186_v39 = vand.u32 65535, %v1182_v34  ;;  %v1187_v37 = vshrl.u32 %v1182_v34, 16  ;;  %v1211_v40 = vmul.u32 %v1209_v28, %v1184_v50  ;;  %v935_v33 = vsub.s32 32, %v4798_v42 }
 0x160   :  { %v3933_v53 = vadd.s32 4294967294, %v1086_v55  ;;  %v1212_v59 = vmul.u32 %v1208_v58, %v1185_v30  ;;  %v940_v55 = vadd.s32 127, %v939_v41  ;;  %v1151_v3 = vshrl.u32 %v5968_v60, %v4752_v26 }
 0x161   :  { %v1189_v46 = vmul.u32 %v1187_v37, %v1184_v50  ;;  %v1190_v45 = vmul.u32 %v1186_v39, %v1185_v30  ;;  %v1214_v13 = vshll.u32 %v1211_v40, 16  ;;  %v1172_v38 = vsel %vm1170_vm10, %v1160_v7, 2102212464 }
 0x162   :  { %vm3934_vm13 = vcmp.lt.s32.totalorder %v3933_v53, 0  ;;  %v1188_v17 = vmul.u32 %v1186_v39, %v1184_v50  ;;  %v1210_v22 = vmul.u32 %v1208_v58, %v1184_v50  ;;  %v1191_v51 = vmul.u32 %v1187_v37, %v1185_v30 }
 0x163   :  { %v4819_v36 = vsel %vm3934_vm13, 0, %v3933_v53  ;;  %v1293_v53 = vand.u32 2139095040, %v4817_v6  ;;  %v1192_v8 = vshll.u32 %v1189_v46, 16  ;;  %v1194_v0 = vshll.u32 %v1190_v45, 16 }
 0x164   :  { %v1094_v4 = vsub.s32 4294967266, %v4819_v36  ;;  %v1213_v61 = vmul.u32 %v1209_v28, %v1185_v30  ;;  %v1216_v21 = vshll.u32 %v1212_v59, 16  ;;  %vm1218_vm15 = vc.u32 %v1210_v22, %v1214_v13 }
 0x165   :  { %vm1196_vm14 = vc.u32 %v1188_v17, %v1192_v8  ;;  %v1198_v56 = vadd.s32 %v1192_v8, %v1188_v17  ;;  %v1220_v41 = vadd.s32 %v1214_v13, %v1210_v22  ;;  %v1219_v48 = vsel %vm1218_vm15, 1, %v5980_v49 }
 0x166   :  { %v1095_v34 = vadd.s32 127, %v1094_v4  ;;  %v1197_v26 = vsel %vm1196_vm14, 1, %v5980_v49  ;;  %v1294_v15 = vshrl.u32 %v1293_v53, 23  ;;  %v1221_v7 = vadd.s32 %v1219_v48, %v1213_v61 }
 0x167   :  { %v1199_v19 = vadd.s32 %v1197_v26, %v1191_v51  ;;  %vm1200_vm0 = vc.u32 %v1198_v56, %v1194_v0  ;;  %vm1222_vm1 = vc.u32 %v1220_v41, %v1216_v21  ;;  %v1090_v50 = vsub.s32 32, %v4819_v36 }
 0x168   :  { %v1171_v58 = vsel %vm1167_vm9, %v1151_v3, %v4778_v20  ;;  %v1201_v28 = vsel %vm1200_vm0, 1, %v5980_v49  ;;  %v1223_v30 = vsel %vm1222_vm1, 1, %v5980_v49  ;;  %v1193_v39 = vshrl.u32 %v1189_v46, 16 }
 0x169   :  { %v1203_v37 = vadd.s32 %v1201_v28, %v1199_v19  ;;  %v1215_v4 = vshrl.u32 %v1211_v40, 16  ;;  %v1225_v13 = vadd.s32 %v1223_v30, %v1221_v7  ;;  %v1096_v17 = vshll.u32 %v1095_v34, 23 }
 0x16a   :  { %v1173_v53 = vsel %vm1169_vm11, %v4780_v35, %v1172_v38  ;;  %v1195_v8 = vshrl.u32 %v1190_v45, 16  ;;  %v3938_v22 = vadd.s32 4294967169, %v1294_v15  ;;  %v1217_v0 = vshrl.u32 %v1212_v59, 16 }
 0x16b   :  { %v1204_v51 = vadd.s32 %v1203_v37, %v1193_v39  ;;  %v1226_v61 = vadd.s32 %v1225_v13, %v1215_v4  ;;  %v4843_v20 = vadd.f32 %v4794_v16, %v4560_v47  ;;  %v919_v46 = vadd.s32 %v4672_v25, %v4683_v43  ;;  %v4870_v39 = vpop.f32.mrf.mxu3 }
 0x16c   :  { %v941_v19 = vshll.u32 %v940_v55, 23  ;;  %v1092_v40 = vshrl.u32 %v1074_v44, %v1090_v50  ;;  %v1300_v3 = vadd.s32 1, %v3938_v22  ;;  %v1174_v56 = vsel %vm1168_vm12, %v1171_v58, %v1173_v53 }
 0x16d   :  { %v4849_v34 = vadd.s32 %v1204_v51, %v1195_v8  ;;  %v4851_v35 = vadd.s32 %v1220_v41, %v1216_v21  ;;  %v1227_v15 = vadd.s32 %v1226_v61, %v1217_v0  ;;  %v1091_v59 = vshll.u32 %v4757_v63, %v4819_v36 }
 0x16e   :  { %v1097_v45 = vor.u32 4788187, %v1096_v17  ;;  %vm1301_vm2 = vcmp.gt.s32.totalorder %v1300_v3, 0  ;;  %v937_v47 = vshrl.u32 %v919_v46, %v935_v33  ;;  %v1228_v29 = vmul.u32 %v4783_v18, %v1174_v56 }
 0x16f   :  { %vm1230_vm3 = vc.u32 %v4849_v34, %v4851_v35  ;;  %v1231_v25 = vadd.s32 1, %v1227_v15  ;;  %v1302_v43 = vsel %vm1301_vm2, %v1300_v3, 0  ;;  %v1093_v16 = vor.u32 %v1092_v40, %v1091_v59 }
 0x170   :  { %v1304_v44 = vand.u32 31, %v1302_v43  ;;  %v936_v55 = vshll.u32 %v4741_v12, %v4798_v42  ;;  %v942_v38 = vor.u32 4788187, %v941_v19  ;;  %v1098_v41 = vand.u32 2147483647, %v1097_v45 }
 0x171   :  { %v1232_v21 = vsel %vm1230_vm3, %v1231_v25, %v1227_v15  ;;  %v1100_v36 = vcvt.s32.f32 %v1093_v16  ;;  %v5976_v33 = vand.u32 2147483647, %v4817_v6  ;;  %v4879_v8 = vshrl.u32 %v1302_v43, 5 }
 0x172   :  { %v1233_v26 = vadd.s32 %v1232_v21, %v1228_v29  ;;  %v938_v63 = vor.u32 %v937_v47, %v936_v55  ;;  %v4861_v7 = vsub.s32 32, %v1304_v44  ;;  %v943_v50 = vand.u32 2147483647, %v942_v38 }
 0x173   :  { %v1101_v58 = vmul.f32 %v1100_v36, %v1098_v41  ;;  %v1297_v12 = vand.u32 8388607, %v5976_v33  ;;  %v1316_v22 = vshll.u32 %v5974_v31, %v1304_v44  ;;  %v1307_v51 = vshll.u32 %v5968_v60, %v1304_v44  ;;  %v740_v21 = vpop.f32.mrf.mxu3 }
 0x174   :  { %v1234_v48 = vadd.s32 536870912, %v1233_v26  ;;  %v945_v18 = vcvt.s32.f32 %v938_v63  ;;  %v1317_v42 = vshrl.u32 %v5978_v52, %v4861_v7  ;;  %v1308_v4 = vshrl.u32 %v5972_v10, %v4861_v7 }
 0x175   :  { %v1311_v13 = vshrl.u32 %v5970_v23, %v4861_v7  ;;  %v1102_v17 = vxor.u32 2147483648, %v1101_v58  ;;  %v1310_v0 = vshll.u32 %v5972_v10, %v1304_v44  ;;  %v1314_v61 = vshrl.u32 %v5974_v31, %v4861_v7 }
 0x176   :  { %v4863_v28 = vshrl.u32 %v1234_v48, 30  ;;  %v946_v37 = vmul.f32 %v945_v18, %v943_v50  ;;  %v1320_v46 = vshrl.u32 %v5966_v9, %v4861_v7  ;;  %v1298_v40 = vor.u32 8388608, %v1297_v12 }
 0x177   :  { %v1318_v3 = vor.u32 %v1317_v42, %v1316_v22  ;;  %v4890_v56 = vor.u32 %v1308_v4, %v1307_v51  ;;  %v4892_v15 = vor.u32 %v1311_v13, %v1310_v0  ;;  %v1313_v59 = vshll.u32 %v5970_v23, %v1304_v44 }
 0x178   :  { %v1236_v30 = vshll.u32 %v4863_v28, 30  ;;  %v1319_v45 = vshll.u32 %v5978_v52, %v1304_v44  ;;  %v1103_v47 = vsel %vm982_vm4, %v1102_v17, %v1101_v58  ;;  %vm1325_vm6 = vcmp.lt.s32.totalorder %v4879_v8, 4 }
 0x179   :  { %v1315_v16 = vor.u32 %v1314_v61, %v1313_v59  ;;  %v947_v55 = vxor.u32 2147483648, %v946_v37  ;;  %vm4902_vm7 = vcmp.le.f32.partialorder %v980_v27, 0.7853982  ;;  %vm1322_vm8 = vcmp.lt.s32.totalorder %v4879_v8, 1 }
 0x17a   :  { %v4877_v53 = vsub.s32 %v1233_v26, %v1236_v30  ;;  %v1321_v29 = vor.u32 %v1320_v46, %v1319_v45  ;;  %v1331_v44 = vsel %vm1325_vm6, %v1318_v3, 920167782  ;;  %v4912_v41 = vsel %vm4902_vm7, %v4576_v14, %v1103_v47 }
 0x17b   :  { %v1330_v27 = vsel %vm1322_vm8, %v4890_v56, %v4892_v15  ;;  %v4918_v63 = vshll.u32 %v1298_v40, 8  ;;  %vm827_vm9 = vcmp.lt.s32.totalorder %v4574_v5, 0  ;;  %vm1323_vm10 = vcmp.lt.s32.totalorder %v4879_v8, 2 }
 0x17c   :  { %vm1238_vm5 = vcmp.lt.s32.totalorder %v4877_v53, 0  ;;  %v1239_v19 = vsub.s32 0, %v4877_v53  ;;  %vm1324_vm11 = vcmp.lt.s32.totalorder %v4879_v8, 3  ;;  %v1334_v48 = vsel %vm1322_vm8, %v4892_v15, %v1315_v16 }
 0x17d   :  { %v1332_v36 = vsel %vm1324_vm11, %v1315_v16, %v1331_v44  ;;  %v1335_v50 = vsel %vm1325_vm6, %v1321_v29, 1326507024  ;;  %v948_v58 = vsel %vm827_vm9, %v947_v55, %v946_v37  ;;  %v4934_v18 = vmul.f32 %v4912_v41, %v4912_v41 }
 0x17e   :  { %v1240_v25 = vsel %vm1238_vm5, %v1239_v19, %v4877_v53  ;;  %v1333_v30 = vsel %vm1323_vm10, %v1330_v27, %v1332_v36  ;;  %v1336_v12 = vsel %vm1324_vm11, %v1318_v3, %v1335_v50  ;;  %v1339_v4 = vand.u32 65535, %v4918_v63 }
 0x17f   :  { %v1241_v43 = vclz %v1240_v25  ;;  %v1337_v42 = vsel %vm1323_vm10, %v1334_v48, %v1336_v12  ;;  %v1340_v13 = vshrl.u32 %v4918_v63, 16  ;;  %v798_v17 = vperm.slane %v4570_v57, 4 }
 0x180   :  { %v1341_v22 = vand.u32 65535, %v1337_v42  ;;  %v1342_v51 = vshrl.u32 %v1337_v42, 16  ;;  %v1364_v0 = vshrl.u32 %v1333_v30, 16  ;;  %v5995_v61 = vand.u32 2147483647, %v4574_v5 }
 0x181   :  { %v3936_v26 = vadd.s32 4294967294, %v1241_v43  ;;  %v949_v19 = vsub.s32 4, %v4716_v11  ;;  %v1363_v40 = vand.u32 65535, %v1333_v30  ;;  %v1104_v57 = vsub.s32 4, %v4750_v24 }
 0x182   :  { %vm4949_vm13 = vcmp.le.f32.partialorder %v5995_v61, 0.7853982  ;;  %v1344_v59 = vmul.u32 %v1342_v51, %v1339_v4  ;;  %v1345_v45 = vmul.u32 %v1341_v22, %v1340_v13  ;;  %v1116_v47 = vmul.f32 -0.00019511016, %v4934_v18 }
 0x183   :  { %vm3937_vm12 = vcmp.lt.s32.totalorder %v3936_v26, 0  ;;  %v4957_v3 = vsel %vm4949_vm13, %v4574_v5, %v948_v58  ;;  %v1366_v43 = vmul.u32 %v1364_v0, %v1339_v4  ;;  %v4963_v29 = vmul.f32 %v798_v17, %v4843_v20 }
 0x184   :  { %v4945_v37 = vsel %vm3937_vm12, 0, %v3936_v26  ;;  %v1229_v55 = vadd.s32 %v4851_v35, %v4849_v34  ;;  %v1306_v44 = vshrl.u32 %v5968_v60, %v4861_v7  ;;  %v1343_v21 = vmul.u32 %v1341_v22, %v1339_v4 }
 0x185   :  { %v1249_v25 = vsub.s32 4294967266, %v4945_v37  ;;  %v1347_v26 = vshll.u32 %v1344_v59, 16  ;;  %v1327_v27 = vsel %vm1325_vm6, %v1315_v16, 2102212464  ;;  %v1346_v36 = vmul.u32 %v1342_v51, %v1340_v13 }
 0x186   :  { %v1365_v48 = vmul.u32 %v1363_v40, %v1339_v4  ;;  %v1367_v50 = vmul.u32 %v1363_v40, %v1340_v13  ;;  %v1349_v58 = vshll.u32 %v1345_v45, 16  ;;  %v1369_v12 = vshll.u32 %v1366_v43, 16 }
 0x187   :  { %vm1351_vm14 = vc.u32 %v1343_v21, %v1347_v26  ;;  %v1353_v30 = vadd.s32 %v1347_v26, %v1343_v21  ;;  %v1250_v20 = vadd.s32 127, %v1249_v25  ;;  %v1368_v17 = vmul.u32 %v1364_v0, %v1340_v13 }
 0x188   :  { %v1352_v42 = vsel %vm1351_vm14, 1, %v5980_v49  ;;  %v1371_v34 = vshll.u32 %v1367_v50, 16  ;;  %vm1373_vm0 = vc.u32 %v1365_v48, %v1369_v12  ;;  %v1375_v7 = vadd.s32 %v1369_v12, %v1365_v48 }
 0x189   :  { %v1354_v35 = vadd.s32 %v1352_v42, %v1346_v36  ;;  %vm1355_vm15 = vc.u32 %v1353_v30, %v1349_v58  ;;  %v1245_v22 = vsub.s32 32, %v4945_v37  ;;  %v1374_v4 = vsel %vm1373_vm0, 1, %v5980_v49 }
 0x18a   :  { %v1356_v16 = vsel %vm1355_vm15, 1, %v5980_v49  ;;  %v1448_v51 = vand.u32 2139095040, %v4963_v29  ;;  %v1348_v61 = vshrl.u32 %v1344_v59, 16  ;;  %v1376_v21 = vadd.s32 %v1374_v4, %v1368_v17 }
 0x18b   :  { %v1358_v40 = vadd.s32 %v1356_v16, %v1354_v35  ;;  %vm1377_vm1 = vc.u32 %v1375_v7, %v1371_v34  ;;  %v1251_v25 = vshll.u32 %v1250_v20, 23  ;;  %v1350_v26 = vshrl.u32 %v1345_v45, 16 }
 0x18c   :  { %v1378_v13 = vsel %vm1377_vm1, 1, %v5980_v49  ;;  %v1449_v0 = vshrl.u32 %v1448_v51, 23  ;;  %v1370_v58 = vshrl.u32 %v1366_v43, 16  ;;  %v4979_v30 = vadd.f32 %v4870_v39, %v4562_v62 }
 0x18d   :  { %v1359_v36 = vadd.s32 %v1358_v40, %v1348_v61  ;;  %v1380_v48 = vadd.s32 %v1378_v13, %v1376_v21  ;;  %v4983_v12 = vmul.f32 %v4957_v3, %v4957_v3  ;;  %v1326_v59 = vsel %vm1322_vm8, %v1306_v44, %v4890_v56 }
 0x18e   :  { %v1328_v45 = vsel %vm1324_vm11, %v4892_v15, %v1327_v27  ;;  %v3941_v20 = vadd.s32 4294967169, %v1449_v0  ;;  %v1247_v42 = vshrl.u32 %v1229_v55, %v1245_v22  ;;  %v1372_v17 = vshrl.u32 %v1367_v50, 16 }
 0x18f   :  { %5998 = vst [vmem:[#allocation16_spill] sm:$0xff] %v4983_v12  ;;  %v4991_v43 = vadd.s32 %v1359_v36, %v1350_v26  ;;  %v1381_v35 = vadd.s32 %v1380_v48, %v1370_v58  ;;  %v1109_v62 = vmul.f32 -0.001358992, %v4934_v18  ;;  %v1117_v39 = vadd.f32 0.008332121, %v1116_v47 }
 0x190   :  { %v4994_v16 = vadd.s32 %v1375_v7, %v1371_v34  ;;  %v1455_v4 = vadd.s32 1, %v3941_v20  ;;  %v1246_v51 = vshll.u32 %v4877_v53, %v4945_v37  ;;  %v1252_v56 = vor.u32 4788187, %v1251_v25 }
 0x191   :  { %v1329_v44 = vsel %vm1323_vm10, %v1326_v59, %v1328_v45  ;;  %v1382_v15 = vadd.s32 %v1381_v35, %v1372_v17  ;;  %v950_v47 = vsel %vm827_vm9, %v949_v19, %v4716_v11  ;;  %v961_v53 = vmul.f32 -0.00019511016, %v4983_v12 }
 0x192   :  { %vm1385_vm2 = vc.u32 %v4991_v43, %v4994_v16  ;;  %vm1456_vm3 = vcmp.gt.s32.totalorder %v1455_v4, 0  ;;  %v1248_v55 = vor.u32 %v1247_v42, %v1246_v51  ;;  %v1105_v8 = vsel %vm982_vm4, %v1104_v57, %v4750_v24  ;;  %v5041_v51 = vld [vmem:[#allocation7] sm:$0xff] }
 0x193   :  { %v1386_v27 = vadd.s32 1, %v1382_v15  ;;  %v1457_v50 = vsel %vm1456_vm3, %v1455_v4, 0  ;;  %v1383_v37 = vmul.u32 %v4918_v63, %v1329_v44  ;;  %v1110_v34 = vadd.f32 0.041655596, %v1109_v62 }
 0x194   :  { %v1118_v7 = vmul.f32 %v1117_v39, %v4934_v18  ;;  %v1253_v22 = vand.u32 2147483647, %v1252_v56  ;;  %v1459_v21 = vand.u32 31, %v1457_v50  ;;  %v1255_v25 = vcvt.s32.f32 %v1248_v55 }
 0x195   :  { %v1387_v61 = vsel %vm1385_vm2, %v1386_v27, %v1382_v15  ;;  %v5965_v11 = vand.u32 2147483647, %v4963_v29  ;;  %v952_v19 = vsel %vm4949_vm13, 0, %v950_v47  ;;  %v1107_v26 = vsel %vm4902_vm7, 0, %v1105_v8 }
 0x196   :  { %v1388_v40 = vadd.s32 %v1387_v61, %v1383_v37  ;;  %v962_v24 = vadd.f32 0.008332121, %v961_v53  ;;  %v1111_v63 = vmul.f32 %v1110_v34, %v4934_v18  ;;  %v1119_v57 = vadd.f32 -0.16666654, %v1118_v7 }
 0x197   :  { %v1256_v0 = vmul.f32 %v1255_v25, %v1253_v22  ;;  %v5023_v58 = vsub.s32 32, %v1459_v21  ;;  %v1452_v48 = vand.u32 8388607, %v5965_v11  ;;  %v5027_v59 = vadd.s32 3, %v952_v19 }
 0x198   :  { %v1389_v13 = vadd.s32 536870912, %v1388_v40  ;;  %v5029_v46 = vand.u32 3, %v952_v19  ;;  %v1124_v45 = vadd.s32 3, %v1107_v26  ;;  %vm1137_vm4 = vcmp.lt.s32.totalorder %v4714_v1, 0 }
 0x199   :  { %v963_v20 = vmul.f32 %v962_v24, %v4983_v12  ;;  %v1112_v42 = vadd.f32 -0.4999988, %v1111_v63  ;;  %v1120_v17 = vmul.f32 %v1119_v57, %v4934_v18  ;;  %v1257_v35 = vxor.u32 2147483648, %v1256_v0 }
 0x19a   :  { %v5021_v36 = vshrl.u32 %v1389_v13, 30  ;;  %5999 = vst [vmem:[#allocation17_spill] sm:$0xff] %v5029_v46  ;;  %v1463_v39 = vshrl.u32 %v5972_v10, %v5023_v58  ;;  %v1466_v4 = vshrl.u32 %v5970_v23, %v5023_v58  ;;  %v799_v56 = vperm.slane %v5041_v51, 5 }
 0x19b   :  { %v1453_v44 = vor.u32 8388608, %v1452_v48  ;;  %v1469_v15 = vshrl.u32 %v5974_v31, %v5023_v58  ;;  %v1472_v55 = vshrl.u32 %v5978_v52, %v5023_v58  ;;  %v1475_v27 = vshrl.u32 %v5966_v9, %v5023_v58 }
 0x19c   :  { %v1391_v38 = vshll.u32 %v5021_v36, 30  ;;  %v5051_v47 = vshrl.u32 %v1457_v50, 5  ;;  %v1462_v53 = vshll.u32 %v5968_v60, %v1459_v21  ;;  %v1465_v8 = vshll.u32 %v5972_v10, %v1459_v21 }
 0x19d   :  { %v6000_v37 = vand.u32 2147483647, %v4714_v1  ;;  %v1468_v22 = vshll.u32 %v5970_v23, %v1459_v21  ;;  %v1471_v61 = vshll.u32 %v5974_v31, %v1459_v21  ;;  %v5065_v50 = vand.u32 3, %v1107_v26 }
 0x19e   :  { %v5035_v62 = vsub.s32 %v1388_v40, %v1391_v38  ;;  %v1474_v40 = vshll.u32 %v5978_v52, %v1459_v21  ;;  %v1464_v25 = vor.u32 %v1463_v39, %v1462_v53  ;;  %v5067_v19 = vor.u32 %v1466_v4, %v1465_v8  ;;  %v751_v8 = vpop.f32.mrf.mxu0 }
 0x19f   :  { %vm5057_vm6 = vcmp.le.f32.partialorder %v6000_v37, 0.7853982  ;;  %v5070_v13 = vmul.f32 %v799_v56, %v4979_v30  ;;  %v1470_v63 = vor.u32 %v1469_v15, %v1468_v22  ;;  %v1473_v57 = vor.u32 %v1472_v55, %v1471_v61 }
 0x1a0   :  { %vm1393_vm5 = vcmp.lt.s32.totalorder %v5035_v62, 0  ;;  %v1394_v7 = vsub.s32 0, %v5035_v62  ;;  %v1476_v48 = vor.u32 %v1475_v27, %v1474_v40  ;;  %v964_v38 = vadd.f32 -0.16666654, %v963_v20 }
 0x1a1   :  { %v1113_v37 = vmul.f32 %v1112_v42, %v4934_v18  ;;  %v5074_v11 = vand.u32 3, %v1124_v45  ;;  %v1121_v21 = vadd.f32 1.0, %v1120_v17  ;;  %v1258_v26 = vsel %vm1137_vm4, %v1257_v35, %v1256_v0 }
 0x1a2   :  { %v1395_v24 = vsel %vm1393_vm5, %v1394_v7, %v5035_v62  ;;  %vm1477_vm7 = vcmp.lt.s32.totalorder %v5051_v47, 1  ;;  %v5079_v39 = vshll.u32 %v1453_v44, 8  ;;  %vm1480_vm8 = vcmp.lt.s32.totalorder %v5051_v47, 4 }
 0x1a3   :  { %v1396_v9 = vclz %v1395_v24  ;;  %v1485_v20 = vsel %vm1477_vm7, %v1464_v25, %v5067_v19  ;;  %v1603_v18 = vand.u32 2139095040, %v5070_v13  ;;  %vm1479_vm9 = vcmp.lt.s32.totalorder %v5051_v47, 3 }
 0x1a4   :  { %v1486_v45 = vsel %vm1480_vm8, %v1473_v57, 920167782  ;;  %v1489_v0 = vsel %vm1477_vm7, %v5067_v19, %v1470_v63  ;;  %vm1478_vm11 = vcmp.lt.s32.totalorder %v5051_v47, 2  ;;  %v5100_v35 = vmul.f32 %v964_v38, %v4983_v12 }
 0x1a5   :  { %v3939_v30 = vadd.s32 4294967294, %v1396_v9  ;;  %v1490_v9 = vsel %vm1480_vm8, %v1476_v48, 1326507024  ;;  %v1487_v42 = vsel %vm1479_vm9, %v1470_v63, %v1486_v45  ;;  %v5111_v15 = vsel %vm5057_vm6, %v4714_v1, %v1258_v26 }
 0x1a6   :  { %v1491_v17 = vsel %vm1479_vm9, %v1473_v57, %v1490_v9  ;;  %v1488_v56 = vsel %vm1478_vm11, %v1485_v20, %v1487_v42  ;;  %v1494_v55 = vand.u32 65535, %v5079_v39  ;;  %v1495_v27 = vshrl.u32 %v5079_v39, 16 }
 0x1a7   :  { %vm3940_vm10 = vcmp.lt.s32.totalorder %v3939_v30, 0  ;;  %v1492_v44 = vsel %vm1478_vm11, %v1489_v0, %v1491_v17  ;;  %v1518_v61 = vand.u32 65535, %v1488_v56  ;;  %v1519_v40 = vshrl.u32 %v1488_v56, 16 }
 0x1a8   :  { %v5102_v4 = vsel %vm3940_vm10, 0, %v3939_v30  ;;  %v1496_v53 = vand.u32 65535, %v1492_v44  ;;  %v1497_v22 = vshrl.u32 %v1492_v44, 16  ;;  %v5116_v24 = vadd.f32 1.0, %v1113_v37 }
 0x1a9   :  { %v1404_v7 = vsub.s32 4294967266, %v5102_v4  ;;  %v5119_v57 = vmul.f32 %v1121_v21, %v4912_v41  ;;  %v1461_v48 = vshrl.u32 %v5968_v60, %v5023_v58  ;;  %v1604_v38 = vshrl.u32 %v1603_v18, 23 }
 0x1aa   :  { %v5125_v26 = vmul.f32 %v5111_v15, %v5111_v15  ;;  %v1499_v30 = vmul.u32 %v1497_v22, %v1494_v55  ;;  %v1500_v20 = vmul.u32 %v1496_v53, %v1495_v27  ;;  %v1521_v45 = vmul.u32 %v1519_v40, %v1494_v55 }
 0x1ab   :  { %v1384_v0 = vadd.s32 %v4994_v16, %v4991_v43  ;;  %v1400_v37 = vsub.s32 32, %v5102_v4  ;;  %v1481_v41 = vsel %vm1477_vm7, %v1461_v48, %v1464_v25  ;;  %v1482_v21 = vsel %vm1480_vm8, %v1470_v63, 2102212464  ;;  %v753_v48 = vpop.f32.mrf.mxu0 }
 0x1ac   :  { %v1405_v58 = vadd.s32 127, %v1404_v7  ;;  %v1498_v18 = vmul.u32 %v1496_v53, %v1494_v55  ;;  %v1502_v9 = vshll.u32 %v1499_v30, 16  ;;  %v1522_v42 = vmul.u32 %v1518_v61, %v1495_v27 }
 0x1ad   :  { %v1501_v17 = vmul.u32 %v1497_v22, %v1495_v27  ;;  %v1520_v56 = vmul.u32 %v1518_v61, %v1494_v55  ;;  %v1524_v44 = vshll.u32 %v1521_v45, 16  ;;  %v3944_v60 = vadd.s32 4294967169, %v1604_v38 }
 0x1ae   :  { %v1504_v23 = vshll.u32 %v1500_v20, 16  ;;  %vm1506_vm12 = vc.u32 %v1498_v18, %v1502_v9  ;;  %v1508_v10 = vadd.s32 %v1502_v9, %v1498_v18  ;;  %v1523_v43 = vmul.u32 %v1519_v40, %v1495_v27 }
 0x1af   :  { %v1507_v16 = vsel %vm1506_vm12, 1, %v5980_v49  ;;  %v1526_v31 = vshll.u32 %v1522_v42, 16  ;;  %vm1528_vm13 = vc.u32 %v1520_v56, %v1524_v44  ;;  %v1530_v25 = vadd.s32 %v1524_v44, %v1520_v56 }
 0x1b0   :  { %v1406_v33 = vshll.u32 %v1405_v58, 23  ;;  %v1509_v63 = vadd.s32 %v1507_v16, %v1501_v17  ;;  %vm1510_vm14 = vc.u32 %v1508_v10, %v1504_v23  ;;  %v1529_v53 = vsel %vm1528_vm13, 1, %v5980_v49 }
 0x1b1   :  { %v1483_v55 = vsel %vm1479_vm9, %v5067_v19, %v1482_v21  ;;  %v1511_v7 = vsel %vm1510_vm14, 1, %v5980_v49  ;;  %v1531_v22 = vadd.s32 %v1529_v53, %v1523_v43  ;;  %vm1532_vm15 = vc.u32 %v1530_v25, %v1526_v31 }
 0x1b2   :  { %v1402_v27 = vshrl.u32 %v1384_v0, %v1400_v37  ;;  %v1503_v61 = vshrl.u32 %v1499_v30, 16  ;;  %v1513_v40 = vadd.s32 %v1511_v7, %v1509_v63  ;;  %v1533_v38 = vsel %vm1532_vm15, 1, %v5980_v49 }
 0x1b3   :  { %vm2523_vm0 = vcmp.eq.s32.totalorder %v5065_v50, 2  ;;  %v1401_v10 = vshll.u32 %v5035_v62, %v5102_v4  ;;  %v1525_v23 = vshrl.u32 %v1521_v45, 16  ;;  %v1535_v58 = vadd.s32 %v1533_v38, %v1531_v22 }
 0x1b4   :  { %v1610_v18 = vadd.s32 1, %v3944_v60  ;;  %vm2520_vm1 = vcmp.eq.s32.totalorder %v5065_v50, 0  ;;  %v1407_v19 = vor.u32 4788187, %v1406_v33  ;;  %v1505_v21 = vshrl.u32 %v1500_v20, 16 }
 0x1b5   :  { %v1514_v9 = vadd.s32 %v1513_v40, %v1503_v61  ;;  %v5146_v17 = vadd.f32 %v751_v8, %v4564_v2  ;;  %v1271_v30 = vmul.f32 -0.00019511016, %v5125_v26  ;;  %v1527_v0 = vshrl.u32 %v1522_v42, 16 }
 0x1b6   :  { %v1536_v37 = vadd.s32 %v1535_v58, %v1525_v23  ;;  %vm1611_vm2 = vcmp.gt.s32.totalorder %v1610_v18, 0  ;;  %v1403_v56 = vor.u32 %v1402_v27, %v1401_v10  ;;  %v5151_v62 = vadd.s32 %v1530_v25, %v1526_v31 }
 0x1b7   :  { %v5149_v44 = vadd.s32 %v1514_v9, %v1505_v21  ;;  %v1612_v4 = vsel %vm1611_vm2, %v1610_v18, 0  ;;  %vm1126_vm3 = vcmp.lt.s32.totalorder %v5074_v11, 2  ;;  %v1131_v60 = vxor.u32 2147483648, %v5116_v24 }
 0x1b8   :  { %v1484_v33 = vsel %vm1478_vm11, %v1481_v41, %v1483_v55  ;;  %v1537_v2 = vadd.s32 %v1536_v37, %v1527_v0  ;;  %v1614_v8 = vand.u32 31, %v1612_v4  ;;  %vm1130_vm5 = vcmp.eq.s32.totalorder %v5074_v11, 2 }
 0x1b9   :  { %v1259_v20 = vsub.s32 4, %v4863_v28  ;;  %v1408_v45 = vand.u32 2147483647, %v1407_v19  ;;  %vm1540_vm7 = vc.u32 %v5149_v44, %v5151_v62  ;;  %v1128_v31 = vxor.u32 2147483648, %v5119_v57 }
 0x1ba   :  { %v1264_v42 = vmul.f32 -0.001358992, %v5125_v26  ;;  %v1541_v43 = vadd.s32 1, %v1537_v2  ;;  %v5163_v16 = vsub.s32 32, %v1614_v8  ;;  %v1272_v25 = vadd.f32 0.008332121, %v1271_v30 }
 0x1bb   :  { %v1410_v47 = vcvt.s32.f32 %v1403_v56  ;;  %v1538_v41 = vmul.u32 %v5079_v39, %v1484_v33  ;;  %v5977_v48 = vand.u32 2147483647, %v5070_v13  ;;  %v966_v63 = vadd.f32 1.0, %v5100_v35 }
 0x1bc   :  { %vm1127_vm8 = vcmp.eq.s32.totalorder %v5074_v11, 0  ;;  %v1132_v53 = vsel %vm1130_vm5, %v1131_v60, %v5119_v57  ;;  %vm1292_vm9 = vcmp.lt.s32.totalorder %v4817_v6, 0  ;;  %v1542_v55 = vsel %vm1540_vm7, %v1541_v43, %v1537_v2 }
 0x1bd   :  { %vm2519_vm10 = vcmp.lt.s32.totalorder %v5065_v50, 2  ;;  %v2525_v7 = vsel %vm2523_vm0, %v1131_v60, %v5119_v57  ;;  %v1260_v39 = vsel %vm1137_vm4, %v1259_v20, %v4863_v28  ;;  %v1411_v22 = vmul.f32 %v1410_v47, %v1408_v45 }
 0x1be   :  { %v1543_v27 = vadd.s32 %v1542_v55, %v1538_v41  ;;  %v1129_v35 = vsel %vm1127_vm8, %v5116_v24, %v1128_v31  ;;  %v2522_v61 = vsel %vm2520_vm1, %v5116_v24, %v1128_v31  ;;  %v1265_v40 = vadd.f32 0.041655596, %v1264_v42 }
 0x1bf   :  { %v1627_v38 = vshrl.u32 %v5978_v52, %v5163_v16  ;;  %v1273_v10 = vmul.f32 %v1272_v25, %v5125_v26  ;;  %v6003_v57 = vand.u32 2147483647, %v4817_v6  ;;  %v1607_v58 = vand.u32 8388607, %v5977_v48 }
 0x1c0   :  { %v1544_v28 = vadd.s32 536870912, %v1543_v27  ;;  %v6006_v18 = vmov 2102212464   ;;  %v5194_v21 = vshrl.u32 %v1612_v4, 5  ;;  %v6007_v24 = vmov 2475754826  }
 0x1c1   :  { %vm5187_vm11 = vcmp.le.f32.partialorder %v6003_v57, 0.7853982  ;;  %v1626_v19 = vshll.u32 %v6006_v18, %v1614_v8  ;;  %v1618_v9 = vshrl.u32 %v6007_v24, %v5163_v16  ;;  %v6008_v30 = vmov 2131351028  }
 0x1c2   :  { %v1621_v0 = vshrl.u32 %v6008_v30, %v5163_v16  ;;  %v1624_v37 = vshrl.u32 %v6006_v18, %v5163_v16  ;;  %vm1123_vm4 = vweird.f32 %v4576_v14  ;;  %v1133_v56 = vsel %vm1126_vm3, %v1129_v35, %v1132_v53 }
 0x1c3   :  { %v1412_v60 = vxor.u32 2147483648, %v1411_v22  ;;  %v5205_v33 = vshrl.u32 %v1544_v28, 30  ;;  %v1628_v2 = vor.u32 %v1627_v38, %v1626_v19  ;;  %v1266_v4 = vmul.f32 %v1265_v40, %v5125_v26 }
 0x1c4   :  { %v6009_v20 = vmov 683565275   ;;  %v1620_v31 = vshll.u32 %v6007_v24, %v1614_v8  ;;  %v1623_v42 = vshll.u32 %v6008_v30, %v1614_v8  ;;  %v1262_v43 = vsel %vm5057_vm6, 0, %v1260_v39 }
 0x1c5   :  { %v1617_v45 = vshll.u32 %v6009_v20, %v1614_v8  ;;  %v1274_v25 = vadd.f32 -0.16666654, %v1273_v10  ;;  %v1546_v47 = vshll.u32 %v5205_v33, 30  ;;  %v1608_v11 = vor.u32 8388608, %v1607_v58  ;;  %v5229_v10 = vpop.f32.mrf.mxu1 }
 0x1c6   :  { %v5216_v53 = vor.u32 %v1621_v0, %v1620_v31  ;;  %v5218_v55 = vor.u32 %v1624_v37, %v1623_v42  ;;  %vm1635_vm12 = vcmp.lt.s32.totalorder %v5194_v21, 4  ;;  %v1413_v35 = vsel %vm1292_vm9, %v1412_v60, %v1411_v22 }
 0x1c7   :  { %v5214_v41 = vor.u32 %v1618_v9, %v1617_v45  ;;  %v5223_v40 = vsub.s32 %v1543_v27, %v1546_v47  ;;  %v6010_v34 = vmov 1326507024   ;;  %v1641_v38 = vsel %vm1635_vm12, %v1628_v2, 920167782 }
 0x1c8   :  { %v1630_v39 = vshrl.u32 %v6010_v34, %v5163_v16  ;;  %v2526_v57 = vsel %vm2519_vm10, %v2522_v61, %v2525_v7  ;;  %v1267_v28 = vadd.f32 -0.4999988, %v1266_v4  ;;  %v1279_v58 = vadd.s32 3, %v1262_v43 }
 0x1c9   :  { %v1629_v19 = vshll.u32 %v5978_v52, %v1614_v8  ;;  %vm1548_vm6 = vcmp.lt.s32.totalorder %v5223_v40, 0  ;;  %v1549_v22 = vsub.s32 0, %v5223_v40  ;;  %vm1632_vm13 = vcmp.lt.s32.totalorder %v5194_v21, 1 }
 0x1ca   :  { %vm1634_vm14 = vcmp.lt.s32.totalorder %v5194_v21, 3  ;;  %v1275_v27 = vmul.f32 %v1274_v25, %v5125_v26  ;;  %v5242_v9 = vsel %vm5187_vm11, %v4817_v6, %v1413_v35  ;;  %v1640_v50 = vsel %vm1632_vm13, %v5214_v41, %v5216_v53 }
 0x1cb   :  { %v1642_v8 = vsel %vm1634_vm14, %v5218_v55, %v1641_v38  ;;  %v5252_v7 = vand.u32 3, %v5027_v59  ;;  %v1550_v61 = vsel %vm1548_vm6, %v1549_v22, %v5223_v40  ;;  %v1631_v0 = vor.u32 %v1630_v39, %v1629_v19 }
 0x1cc   :  { %v5255_v37 = vshll.u32 %v1608_v11, 8  ;;  %v5258_v60 = vmul.f32 %v966_v63, %v4957_v3  ;;  %v5262_v4 = vsel %vm1123_vm4, nan, %v1133_v56  ;;  %v1551_v45 = vclz %v1550_v61 }
 0x1cd   :  { %6011 = vst [vmem:[#allocation18_spill] sm:$0xff] %v5252_v7  ;;  %vm1633_vm15 = vcmp.lt.s32.totalorder %v5194_v21, 2  ;;  %v5267_v31 = vsel %vm1123_vm4, nan, %v2526_v57  ;;  %v5269_v59 = vand.u32 3, %v1262_v43  ;;  %v5273_v42 = vmul.f32 %v5242_v9, %v5242_v9  ;;  %v766_v39 = vpop.f32.mrf.mxu1 }
 0x1ce   :  { %6012 = vst [vmem:[#allocation19_spill] sm:$0xff] %v5262_v4  ;;  %v1643_v3 = vsel %vm1633_vm15, %v1640_v50, %v1642_v8  ;;  %v1268_v63 = vmul.f32 %v1267_v28, %v5125_v26  ;;  %v1276_v56 = vadd.f32 1.0, %v1275_v27  ;;  %v5278_v25 = vand.u32 3, %v1279_v58 }
 0x1cf   :  { %6013 = vst [vmem:[#allocation20_spill] sm:$0xff] %v5267_v31  ;;  %v3942_v47 = vadd.s32 4294967294, %v1551_v45  ;;  %v1644_v14 = vsel %vm1632_vm13, %v5216_v53, %v5218_v55  ;;  %v1645_v43 = vsel %vm1635_vm12, %v1631_v0, 1326507024  ;;  %v1649_v11 = vand.u32 65535, %v5255_v37 }
 0x1d0   :  { %v800_v35 = vperm.slane %v5041_v51, 6  ;;  %v1646_v26 = vsel %vm1634_vm14, %v1628_v2, %v1645_v43  ;;  %v1673_v38 = vand.u32 65535, %v1643_v3  ;;  %v1674_v57 = vshrl.u32 %v1643_v3, 16 }
 0x1d1   :  { %vm3943_vm0 = vcmp.lt.s32.totalorder %v3942_v47, 0  ;;  %v1419_v28 = vmul.f32 -0.001358992, %v5273_v42  ;;  %v1426_v58 = vmul.f32 -0.00019511016, %v5273_v42  ;;  %v1647_v22 = vsel %vm1633_vm15, %v1644_v14, %v1646_v26 }
 0x1d2   :  { %v5292_v19 = vsel %vm3943_vm0, 0, %v3942_v47  ;;  %v5296_v27 = vadd.f32 1.0, %v1268_v63  ;;  %v1650_v8 = vshrl.u32 %v5255_v37, 16  ;;  %v1651_v61 = vand.u32 65535, %v1647_v22 }
 0x1d3   :  { %v1559_v50 = vsub.s32 4294967266, %v5292_v19  ;;  %v5301_v2 = vmul.f32 %v1276_v56, %v5111_v15  ;;  %v1652_v45 = vshrl.u32 %v1647_v22, 16  ;;  %v1676_v3 = vmul.u32 %v1674_v57, %v1649_v11 }
 0x1d4   :  { %v1539_v47 = vadd.s32 %v5151_v62, %v5149_v44  ;;  %v1655_v43 = vmul.u32 %v1651_v61, %v1650_v8  ;;  %v1677_v39 = vmul.u32 %v1673_v38, %v1650_v8  ;;  %v5307_v63 = vmul.f32 %v800_v35, %v5146_v17 }
 0x1d5   :  { %v1420_v14 = vadd.f32 0.041655596, %v1419_v28  ;;  %v1427_v26 = vadd.f32 0.008332121, %v1426_v58  ;;  %v1654_v48 = vmul.u32 %v1652_v45, %v1649_v11  ;;  %v1679_v52 = vshll.u32 %v1676_v3, 16 }
 0x1d6   :  { %v1560_v49 = vadd.s32 127, %v1559_v50  ;;  %v1616_v15 = vshrl.u32 %v6009_v20, %v5163_v16  ;;  %v1637_v56 = vsel %vm1635_vm12, %v5218_v55, 2102212464  ;;  %v1675_v22 = vmul.u32 %v1673_v38, %v1649_v11 }
 0x1d7   :  { %v1555_v44 = vsub.s32 32, %v5292_v19  ;;  %v1653_v62 = vmul.u32 %v1651_v61, %v1649_v11  ;;  %v1656_v0 = vmul.u32 %v1652_v45, %v1650_v8  ;;  %v1657_v5 = vshll.u32 %v1654_v48, 16 }
 0x1d8   :  { %v1659_v17 = vshll.u32 %v1655_v43, 16  ;;  %v1678_v35 = vmul.u32 %v1674_v57, %v1650_v8  ;;  %v1681_v28 = vshll.u32 %v1677_v39, 16  ;;  %vm1683_vm1 = vc.u32 %v1675_v22, %v1679_v52 }
 0x1d9   :  { %vm1661_vm2 = vc.u32 %v1653_v62, %v1657_v5  ;;  %v1663_v58 = vadd.s32 %v1657_v5, %v1653_v62  ;;  %v6014_v50 = vmov 0   ;;  %v1685_v7 = vadd.s32 %v1679_v52, %v1675_v22 }
 0x1da   :  { %v1684_v46 = vsel %vm1683_vm1, 1, %v6014_v50  ;;  %v1561_v16 = vshll.u32 %v1560_v49, 23  ;;  %v1636_v55 = vsel %vm1632_vm13, %v1616_v15, %v5214_v41  ;;  %v1662_v38 = vsel %vm1661_vm2, 1, %v6014_v50 }
 0x1db   :  { %v1686_v12 = vadd.s32 %v1684_v46, %v1678_v35  ;;  %v1638_v11 = vsel %vm1634_vm14, %v5216_v53, %v1637_v56  ;;  %v1664_v57 = vadd.s32 %v1662_v38, %v1656_v0  ;;  %vm1665_vm3 = vc.u32 %v1663_v58, %v1659_v17 }
 0x1dc   :  { %vm1687_vm5 = vc.u32 %v1685_v7, %v1681_v28  ;;  %v1557_v8 = vshrl.u32 %v1539_v47, %v1555_v44  ;;  %v1658_v5 = vshrl.u32 %v1654_v48, 16  ;;  %v1666_v61 = vsel %vm1665_vm3, 1, %v6014_v50 }
 0x1dd   :  { %v1688_v52 = vsel %vm1687_vm5, 1, %v6014_v50  ;;  %vm2674_vm7 = vcmp.eq.s32.totalorder %v5269_v59, 0  ;;  %v1668_v49 = vadd.s32 %v1666_v61, %v1664_v57  ;;  %v1680_v41 = vshrl.u32 %v1676_v3, 16 }
 0x1de   :  { %v1690_v45 = vadd.s32 %v1688_v52, %v1686_v12  ;;  %v1758_v46 = vand.u32 2139095040, %v5307_v63  ;;  %v1556_v15 = vshll.u32 %v5223_v40, %v5292_v19  ;;  %v1562_v53 = vor.u32 4788187, %v1561_v16 }
 0x1df   :  { %v1660_v0 = vshrl.u32 %v1655_v43, 16  ;;  %v5331_v47 = vadd.f32 %v5229_v10, %v4566_v32  ;;  %vm2677_vm8 = vcmp.eq.s32.totalorder %v5269_v59, 2  ;;  %v1669_v48 = vadd.s32 %v1668_v49, %v1658_v5 }
 0x1e0   :  { %v1682_v56 = vshrl.u32 %v1677_v39, 16  ;;  %v1691_v22 = vadd.s32 %v1690_v45, %v1680_v41  ;;  %v1759_v44 = vshrl.u32 %v1758_v46, 23  ;;  %v1283_v3 = vxor.u32 2147483648, %v5301_v2 }
 0x1e1   :  { %vm2673_vm10 = vcmp.lt.s32.totalorder %v5269_v59, 2  ;;  %v1428_v12 = vmul.f32 %v1427_v26, %v5273_v42  ;;  %v1558_v62 = vor.u32 %v1557_v8, %v1556_v15  ;;  %v1639_v40 = vsel %vm1633_vm15, %v1636_v55, %v1638_v11 }
 0x1e2   :  { %v5339_v19 = vadd.s32 %v1669_v48, %v1660_v0  ;;  %v5341_v32 = vadd.s32 %v1685_v7, %v1681_v28  ;;  %v1692_v10 = vadd.s32 %v1691_v22, %v1682_v56  ;;  %v3947_v43 = vadd.s32 4294967169, %v1759_v44 }
 0x1e3   :  { %vm1281_vm4 = vcmp.lt.s32.totalorder %v5278_v25, 2  ;;  %vm1282_vm12 = vcmp.eq.s32.totalorder %v5278_v25, 0  ;;  %v1286_v39 = vxor.u32 2147483648, %v5296_v27  ;;  %v1563_v17 = vand.u32 2147483647, %v1562_v53 }
 0x1e4   :  { %v1421_v35 = vmul.f32 %v1420_v14, %v5273_v42  ;;  %vm1695_vm6 = vc.u32 %v5339_v19, %v5341_v32  ;;  %v1696_v21 = vadd.s32 1, %v1692_v10  ;;  %v1765_v26 = vadd.s32 1, %v3947_v43 }
 0x1e5   :  { %v6015_v7 = vsub.s32 4, %v5021_v36  ;;  %v1429_v58 = vadd.f32 -0.16666654, %v1428_v12  ;;  %v1565_v16 = vcvt.s32.f32 %v1558_v62  ;;  %v1693_v55 = vmul.u32 %v5255_v37, %v1639_v40 }
 0x1e6   :  { %v1284_v38 = vsel %vm1282_vm12, %v5296_v27, %v1283_v3  ;;  %vm1285_vm13 = vcmp.eq.s32.totalorder %v5278_v25, 2  ;;  %v1697_v14 = vsel %vm1695_vm6, %v1696_v21, %v1692_v10  ;;  %vm1766_vm14 = vcmp.gt.s32.totalorder %v1765_v26, 0 }
 0x1e7   :  { %v1415_v28 = vsel %vm1292_vm9, %v6015_v7, %v5021_v36  ;;  %v2676_v11 = vsel %vm2674_vm7, %v5296_v27, %v1283_v3  ;;  %v1566_v57 = vmul.f32 %v1565_v16, %v1563_v17  ;;  %v1698_v8 = vadd.s32 %v1697_v14, %v1693_v55 }
 0x1e8   :  { %v1767_v5 = vsel %vm1766_vm14, %v1765_v26, 0  ;;  %v1287_v61 = vsel %vm1285_vm13, %v1286_v39, %v5301_v2  ;;  %v1417_v36 = vsel %vm5187_vm11, 0, %v1415_v28  ;;  %v1422_v52 = vadd.f32 -0.4999988, %v1421_v35 }
 0x1e9   :  { %v5988_v37 = vand.u32 2147483647, %v5307_v63  ;;  %v1288_v49 = vsel %vm1281_vm4, %v1284_v38, %v1287_v61  ;;  %v2679_v41 = vsel %vm2677_vm8, %v1286_v39, %v5301_v2  ;;  %v1430_v27 = vmul.f32 %v1429_v58, %v5273_v42 }
 0x1ea   :  { %v1699_v45 = vadd.s32 536870912, %v1698_v8  ;;  %vm1278_vm9 = vweird.f32 %v4714_v1  ;;  %v2680_v23 = vsel %vm2673_vm10, %v2676_v11, %v2679_v41  ;;  %v1769_v15 = vand.u32 31, %v1767_v5 }
 0x1eb   :  { %v1434_v0 = vadd.s32 3, %v1417_v36  ;;  %v1567_v25 = vxor.u32 2147483648, %v1566_v57  ;;  %v5378_v2 = vsel %vm1278_vm9, nan, %v1288_v49  ;;  %v1423_v22 = vmul.f32 %v1422_v52, %v5273_v42 }
 0x1ec   :  { %v5375_v48 = vshrl.u32 %v1699_v45, 30  ;;  %v1762_v44 = vand.u32 8388607, %v5988_v37  ;;  %v5383_v1 = vsel %vm1278_vm9, nan, %v2680_v23  ;;  %v1431_v59 = vadd.f32 1.0, %v1430_v27 }
 0x1ed   :  { %6016 = vst [vmem:[#allocation21_spill] sm:$0xff] %v5383_v1  ;;  %v1569_v3 = vsub.s32 4, %v5205_v33  ;;  %v6017_v62 = vand.u32 2147483647, %v4963_v29  ;;  %vm1447_vm15 = vcmp.lt.s32.totalorder %v4963_v29, 0  ;;  %v5394_v10 = vsub.s32 32, %v1769_v15 }
 0x1ee   :  { %v1701_v12 = vshll.u32 %v5375_v48, 30  ;;  %v801_v42 = vperm.slane %v5041_v51, 7  ;;  %v5397_v43 = vand.u32 3, %v1434_v0  ;;  %v5399_v39 = vand.u32 3, %v1417_v36 }
 0x1ef   :  { %vm5389_vm11 = vcmp.le.f32.partialorder %v6017_v62, 0.7853982  ;;  %v1568_v17 = vsel %vm1447_vm15, %v1567_v25, %v1566_v57  ;;  %v5405_v7 = vadd.f32 1.0, %v1423_v22  ;;  %v1763_v28 = vor.u32 8388608, %v1762_v44  ;;  %v5452_v62 = vpop.f32.mrf.mxu2 }
 0x1f0   :  { %v5401_v35 = vsub.s32 %v1698_v8, %v1701_v12  ;;  %v5408_v58 = vmul.f32 %v1431_v59, %v5242_v9  ;;  %v1570_v16 = vsel %vm1447_vm15, %v1569_v3, %v5205_v33  ;;  %v5416_v55 = vsel %vm5389_vm11, %v4963_v29, %v1568_v17 }
 0x1f1   :  { %v1773_v38 = vshrl.u32 %v6007_v24, %v5394_v10  ;;  %v1776_v14 = vshrl.u32 %v6008_v30, %v5394_v10  ;;  %v5423_v9 = vmul.f32 %v801_v42, %v5331_v47  ;;  %v1779_v11 = vshrl.u32 %v6006_v18, %v5394_v10 }
 0x1f2   :  { %vm1703_vm0 = vcmp.lt.s32.totalorder %v5401_v35, 0  ;;  %v1704_v51 = vsub.s32 0, %v5401_v35  ;;  %v6020_v57 = vmov 920167782   ;;  %v1785_v61 = vshrl.u32 %v6010_v34, %v5394_v10 }
 0x1f3   :  { %v1782_v8 = vshrl.u32 %v6020_v57, %v5394_v10  ;;  %v1772_v52 = vshll.u32 %v6009_v20, %v1769_v15  ;;  %v1775_v49 = vshll.u32 %v6007_v24, %v1769_v15  ;;  %v5434_v41 = vshll.u32 %v1763_v28, 8 }
 0x1f4   :  { %v1705_v33 = vsel %vm1703_vm0, %v1704_v51, %v5401_v35  ;;  %v5436_v47 = vshrl.u32 %v1767_v5, 5  ;;  %v1778_v27 = vshll.u32 %v6008_v30, %v1769_v15  ;;  %v1781_v45 = vshll.u32 %v6006_v18, %v1769_v15 }
 0x1f5   :  { %v1706_v36 = vclz %v1705_v33  ;;  %v1784_v23 = vshll.u32 %v6020_v57, %v1769_v15  ;;  %v1441_v0 = vxor.u32 2147483648, %v5405_v7  ;;  %v5442_v22 = vor.u32 %v1773_v38, %v1772_v52 }
 0x1f6   :  { %v5444_v44 = vor.u32 %v1776_v14, %v1775_v49  ;;  %v5448_v59 = vsel %vm5389_vm11, 0, %v1570_v16  ;;  %v5450_v3 = vor.u32 %v1779_v11, %v1778_v27  ;;  %v1783_v5 = vor.u32 %v1782_v8, %v1781_v45 }
 0x1f7   :  { %v3945_v25 = vadd.s32 4294967294, %v1706_v36  ;;  %v1786_v12 = vor.u32 %v1785_v61, %v1784_v23  ;;  %v1438_v42 = vxor.u32 2147483648, %v5408_v58  ;;  %v5457_v15 = vmul.f32 %v5416_v55, %v5416_v55  ;;  %v779_v26 = vpop.f32.mrf.mxu2 }
 0x1f8   :  { %v1694_v17 = vadd.s32 %v5341_v32, %v5339_v19  ;;  %vm1787_vm2 = vcmp.lt.s32.totalorder %v5436_v47, 1  ;;  %v1804_v40 = vand.u32 65535, %v5434_v41  ;;  %v1913_v16 = vand.u32 2139095040, %v5423_v9 }
 0x1f9   :  { %vm3946_vm1 = vcmp.lt.s32.totalorder %v3945_v25, 0  ;;  %vm1790_vm3 = vcmp.lt.s32.totalorder %v5436_v47, 4  ;;  %v1795_v14 = vsel %vm1787_vm2, %v5442_v22, %v5444_v44  ;;  %vm1789_vm5 = vcmp.lt.s32.totalorder %v5436_v47, 3 }
 0x1fa   :  { %v1709_v28 = vsel %vm3946_vm1, 0, %v3945_v25  ;;  %v1796_v19 = vsel %vm1790_vm3, %v1783_v5, 920167782  ;;  %v1799_v32 = vsel %vm1787_vm2, %v5444_v44, %v5450_v3  ;;  %v1800_v33 = vsel %vm1790_vm3, %v1786_v12, 1326507024 }
 0x1fb   :  { %v1710_v51 = vsub.s32 32, %v1709_v28  ;;  %v1714_v38 = vsub.s32 4294967266, %v1709_v28  ;;  %vm1788_vm7 = vcmp.lt.s32.totalorder %v5436_v47, 2  ;;  %v1797_v61 = vsel %vm1789_vm5, %v5450_v3, %v1796_v19 }
 0x1fc   :  { %v1711_v36 = vshll.u32 %v5401_v35, %v1709_v28  ;;  %v1798_v52 = vsel %vm1788_vm7, %v1795_v14, %v1797_v61  ;;  %v1801_v49 = vsel %vm1789_vm5, %v1783_v5, %v1800_v33  ;;  %v1914_v27 = vshrl.u32 %v1913_v16, 23 }
 0x1fd   :  { %v1712_v11 = vshrl.u32 %v1694_v17, %v1710_v51  ;;  %v1715_v8 = vadd.s32 127, %v1714_v38  ;;  %v1802_v23 = vsel %vm1788_vm7, %v1799_v32, %v1801_v49  ;;  %v1805_v25 = vshrl.u32 %v5434_v41, 16 }
 0x1fe   :  { %v1828_v12 = vand.u32 65535, %v1798_v52  ;;  %v1806_v51 = vand.u32 65535, %v1802_v23  ;;  %v1807_v38 = vshrl.u32 %v1802_v23, 16  ;;  %v1829_v19 = vshrl.u32 %v1798_v52, 16 }
 0x1ff   :  { %v1716_v45 = vshll.u32 %v1715_v8, 23  ;;  %v1713_v17 = vor.u32 %v1712_v11, %v1711_v36  ;;  %v1574_v35 = vmul.f32 -0.001358992, %v5457_v15  ;;  %v1581_v5 = vmul.f32 -0.00019511016, %v5457_v15 }
 0x200   :  { %v1809_v16 = vmul.u32 %v1807_v38, %v1804_v40  ;;  %v1810_v33 = vmul.u32 %v1806_v51, %v1805_v25  ;;  %v3950_v8 = vadd.s32 4294967169, %v1914_v27  ;;  %v1771_v32 = vshrl.u32 %v6009_v20, %v5394_v10 }
 0x201   :  { %v1717_v28 = vor.u32 4788187, %v1716_v45  ;;  %v1831_v49 = vmul.u32 %v1829_v19, %v1804_v40  ;;  %v1832_v11 = vmul.u32 %v1828_v12, %v1805_v25  ;;  %v1720_v36 = vcvt.s32.f32 %v1713_v17 }
 0x202   :  { %v1808_v23 = vmul.u32 %v1806_v51, %v1804_v40  ;;  %v1812_v52 = vshll.u32 %v1809_v16, 16  ;;  %v1830_v26 = vmul.u32 %v1828_v12, %v1804_v40  ;;  %vm1602_vm8 = vcmp.lt.s32.totalorder %v5070_v13, 0 }
 0x203   :  { %v1718_v61 = vand.u32 2147483647, %v1717_v28  ;;  %v1811_v45 = vmul.u32 %v1807_v38, %v1805_v25  ;;  %v1814_v56 = vshll.u32 %v1810_v33, 16  ;;  %v1833_v53 = vmul.u32 %v1829_v19, %v1805_v25 }
 0x204   :  { %v1834_v21 = vshll.u32 %v1831_v49, 16  ;;  %vm1816_vm10 = vc.u32 %v1808_v23, %v1812_v52  ;;  %v1818_v37 = vadd.s32 %v1812_v52, %v1808_v23  ;;  %v1920_v27 = vadd.s32 1, %v3950_v8 }
 0x205   :  { %v1721_v46 = vmul.f32 %v1720_v36, %v1718_v61  ;;  %v1817_v28 = vsel %vm1816_vm10, 1, %v6014_v50  ;;  %v1836_v14 = vshll.u32 %v1832_v11, 16  ;;  %vm1437_vm12 = vcmp.eq.s32.totalorder %v5397_v43, 0 }
 0x206   :  { %vm1838_vm4 = vc.u32 %v1830_v26, %v1834_v21  ;;  %v1840_v10 = vadd.s32 %v1834_v21, %v1830_v26  ;;  %v6021_v17 = vand.u32 2147483647, %v5070_v13  ;;  %v1819_v12 = vadd.s32 %v1817_v28, %v1811_v45 }
 0x207   :  { %vm1820_vm13 = vc.u32 %v1818_v37, %v1814_v56  ;;  %v1839_v25 = vsel %vm1838_vm4, 1, %v6014_v50  ;;  %vm1921_vm14 = vcmp.gt.s32.totalorder %v1920_v27, 0  ;;  %v1792_v51 = vsel %vm1790_vm3, %v5450_v3, 2102212464 }
 0x208   :  { %vm5500_vm6 = vcmp.le.f32.partialorder %v6021_v17, 0.7853982  ;;  %v1821_v38 = vsel %vm1820_vm13, 1, %v6014_v50  ;;  %v1841_v21 = vadd.s32 %v1839_v25, %v1833_v53  ;;  %vm1842_vm9 = vc.u32 %v1840_v10, %v1836_v14 }
 0x209   :  { %v1722_v19 = vxor.u32 2147483648, %v1721_v46  ;;  %v1813_v8 = vshrl.u32 %v1809_v16, 16  ;;  %v1823_v61 = vadd.s32 %v1821_v38, %v1819_v12  ;;  %v1843_v36 = vsel %vm1842_vm9, 1, %v6014_v50 }
 0x20a   :  { %v1791_v37 = vsel %vm1787_vm2, %v1771_v32, %v5442_v22  ;;  %v1835_v56 = vshrl.u32 %v1831_v49, 16  ;;  %v1845_v23 = vadd.s32 %v1843_v36, %v1841_v21  ;;  %v1922_v52 = vsel %vm1921_vm14, %v1920_v27, 0 }
 0x20b   :  { %v1793_v3 = vsel %vm1789_vm5, %v5444_v44, %v1792_v51  ;;  %v1815_v26 = vshrl.u32 %v1810_v33, 16  ;;  %v1824_v45 = vadd.s32 %v1823_v61, %v1813_v8  ;;  %v1924_v53 = vand.u32 31, %v1922_v52 }
 0x20c   :  { %v1575_v28 = vadd.f32 0.041655596, %v1574_v35  ;;  %v1582_v17 = vadd.f32 0.008332121, %v1581_v5  ;;  %v1837_v16 = vshrl.u32 %v1832_v11, 16  ;;  %v1846_v12 = vadd.s32 %v1845_v23, %v1835_v56 }
 0x20d   :  { %v1723_v25 = vsel %vm1602_vm8, %v1722_v19, %v1721_v46  ;;  %v5518_v38 = vadd.s32 %v1824_v45, %v1815_v26  ;;  %v5520_v22 = vadd.s32 %v1840_v10, %v1836_v14  ;;  %v5522_v32 = vsub.s32 32, %v1924_v53 }
 0x20e   :  { %vm1440_vm11 = vcmp.eq.s32.totalorder %v5397_v43, 2  ;;  %vm2828_vm15 = vcmp.eq.s32.totalorder %v5399_v39, 0  ;;  %v1794_v44 = vsel %vm1788_vm7, %v1791_v37, %v1793_v3  ;;  %v1847_v35 = vadd.s32 %v1846_v12, %v1837_v16 }
 0x20f   :  { %vm1436_vm0 = vcmp.lt.s32.totalorder %v5397_v43, 2  ;;  %v1442_v46 = vsel %vm1440_vm11, %v1441_v0, %v5408_v58  ;;  %vm2831_vm1 = vcmp.eq.s32.totalorder %v5399_v39, 2  ;;  %v1589_v14 = vadd.s32 3, %v5448_v59 }
 0x210   :  { %v5535_v5 = vand.u32 3, %v5448_v59  ;;  %vm1850_vm2 = vc.u32 %v5518_v38, %v5520_v22  ;;  %v1439_v47 = vsel %vm1437_vm12, %v5405_v7, %v1438_v42  ;;  %vm2827_vm3 = vcmp.lt.s32.totalorder %v5399_v39, 2 }
 0x211   :  { %v5548_v33 = vsel %vm5500_vm6, %v5070_v13, %v1723_v25  ;;  %v1851_v49 = vadd.s32 1, %v1847_v35  ;;  %v6024_v59 = vand.u32 2147483647, %v5423_v9  ;;  %v1576_v27 = vmul.f32 %v1575_v28, %v5457_v15 }
 0x212   :  { %v1583_v10 = vmul.f32 %v1582_v17, %v5457_v15  ;;  %v1848_v51 = vmul.u32 %v5434_v41, %v1794_v44  ;;  %v1937_v21 = vshrl.u32 %v6020_v57, %v5522_v32  ;;  %v1928_v8 = vshrl.u32 %v6007_v24, %v5522_v32 }
 0x213   :  { %v1917_v11 = vand.u32 8388607, %v6024_v59  ;;  %v1852_v19 = vsel %vm1850_vm2, %v1851_v49, %v1847_v35  ;;  %v1931_v61 = vshrl.u32 %v6008_v30, %v5522_v32  ;;  %v1936_v36 = vshll.u32 %v6006_v18, %v1924_v53 }
 0x214   :  { %v5564_v37 = vmul.f32 %v5548_v33, %v5548_v33  ;;  %v1853_v56 = vadd.s32 %v1852_v19, %v1848_v51  ;;  %v5566_v23 = vshrl.u32 %v1922_v52, 5  ;;  %v1934_v41 = vshrl.u32 %v6006_v18, %v5522_v32 }
 0x215   :  { %v1927_v3 = vshll.u32 %v6009_v20, %v1924_v53  ;;  %v1930_v26 = vshll.u32 %v6007_v24, %v1924_v53  ;;  %v1938_v45 = vor.u32 %v1937_v21, %v1936_v36  ;;  %v1940_v28 = vshrl.u32 %v6010_v34, %v5522_v32 }
 0x216   :  { %vm1433_vm5 = vweird.f32 %v4817_v6  ;;  %v1584_v17 = vadd.f32 -0.16666654, %v1583_v10  ;;  %v1854_v16 = vadd.s32 536870912, %v1853_v56  ;;  %v1933_v12 = vshll.u32 %v6008_v30, %v1924_v53 }
 0x217   :  { %v1939_v52 = vshll.u32 %v6020_v57, %v1924_v53  ;;  %v2830_v25 = vsel %vm2828_vm15, %v5405_v7, %v1438_v42  ;;  %v1918_v44 = vor.u32 8388608, %v1917_v11  ;;  %v5582_v35 = vor.u32 %v1928_v8, %v1927_v3 }
 0x218   :  { %v5584_v49 = vor.u32 %v1931_v61, %v1930_v26  ;;  %v5586_v59 = vshrl.u32 %v1854_v16, 30  ;;  %v5588_v51 = vor.u32 %v1934_v41, %v1933_v12  ;;  %vm1945_vm7 = vcmp.lt.s32.totalorder %v5566_v23, 4 }
 0x219   :  { %v1941_v10 = vor.u32 %v1940_v28, %v1939_v52  ;;  %v1443_v53 = vsel %vm1436_vm0, %v1439_v47, %v1442_v46  ;;  %v2833_v42 = vsel %vm2831_vm1, %v1441_v0, %v5408_v58  ;;  %v1736_v11 = vmul.f32 -0.00019511016, %v5564_v37 }
 0x21a   :  { %v1951_v21 = vsel %vm1945_vm7, %v1938_v45, 920167782  ;;  %v2834_v19 = vsel %vm2827_vm3, %v2830_v25, %v2833_v42  ;;  %v1577_v8 = vadd.f32 -0.4999988, %v1576_v27  ;;  %v1585_v61 = vmul.f32 %v1584_v17, %v5457_v15 }
 0x21b   :  { %v1856_v43 = vshll.u32 %v5586_v59, 30  ;;  %v1724_v46 = vsub.s32 4, %v5375_v48  ;;  %vm1942_vm10 = vcmp.lt.s32.totalorder %v5566_v23, 1  ;;  %vm1944_vm4 = vcmp.lt.s32.totalorder %v5566_v23, 3 }
 0x21c   :  { %v5608_v7 = vshll.u32 %v1918_v44, 8  ;;  %v1950_v39 = vsel %vm1942_vm10, %v5582_v35, %v5584_v49  ;;  %v1952_v0 = vsel %vm1944_vm4, %v5588_v51, %v1951_v21  ;;  %v1955_v47 = vsel %vm1945_vm7, %v1941_v10, 1326507024 }
 0x21d   :  { %v1857_v58 = vsub.s32 %v1853_v56, %v1856_v43  ;;  %v1729_v27 = vmul.f32 -0.001358992, %v5564_v37  ;;  %v1737_v36 = vadd.f32 0.008332121, %v1736_v11  ;;  %v1954_v56 = vsel %vm1942_vm10, %v5584_v49, %v5588_v51 }
 0x21e   :  { %v1956_v41 = vsel %vm1944_vm4, %v1938_v45, %v1955_v47  ;;  %v5626_v3 = vand.u32 3, %v1589_v14  ;;  %vm1943_vm13 = vcmp.lt.s32.totalorder %v5566_v23, 2  ;;  %v5631_v28 = vsel %vm1433_vm5, nan, %v1443_v53 }
 0x21f   :  { %vm1858_vm12 = vcmp.lt.s32.totalorder %v1857_v58, 0  ;;  %v1859_v26 = vsub.s32 0, %v1857_v58  ;;  %v5635_v17 = vsel %vm1433_vm5, nan, %v2834_v19  ;;  %v1586_v16 = vadd.f32 1.0, %v1585_v61 }
 0x220   :  { %v1953_v12 = vsel %vm1943_vm13, %v1950_v39, %v1952_v0  ;;  %v5640_v45 = vmul.f32 %v1577_v8, %v5457_v15  ;;  %v1725_v14 = vsel %vm1602_vm8, %v1724_v46, %v5375_v48  ;;  %v1957_v25 = vsel %vm1943_vm13, %v1954_v56, %v1956_v41 }
 0x221   :  { %v1860_v52 = vsel %vm1858_vm12, %v1859_v26, %v1857_v58  ;;  %v1730_v44 = vadd.f32 0.041655596, %v1729_v27  ;;  %v1738_v6 = vmul.f32 %v1737_v36, %v5564_v37  ;;  %v1959_v53 = vand.u32 65535, %v5608_v7 }
 0x222   :  { %v1861_v10 = vclz %v1860_v52  ;;  %v1960_v42 = vshrl.u32 %v5608_v7, 16  ;;  %v1961_v11 = vand.u32 65535, %v1957_v25  ;;  %v1962_v21 = vshrl.u32 %v1957_v25, 16 }
 0x223   :  { %v1984_v15 = vshrl.u32 %v1953_v12, 16  ;;  %v5651_v19 = vmul.f32 %v1586_v16, %v5416_v55  ;;  %v5655_v48 = vsel %vm5500_vm6, 0, %v1725_v14  ;;  %v1983_v61 = vand.u32 65535, %v1953_v12 }
 0x224   :  { %v3948_v8 = vadd.s32 4294967294, %v1861_v10  ;;  %v1849_v43 = vadd.s32 %v5520_v22, %v5518_v38  ;;  %v1926_v46 = vshrl.u32 %v6009_v20, %v5522_v32  ;;  %v1964_v39 = vmul.u32 %v1962_v21, %v1959_v53 }
 0x225   :  { %v1965_v0 = vmul.u32 %v1961_v11, %v1960_v42  ;;  %v1731_v47 = vmul.f32 %v1730_v44, %v5564_v37  ;;  %v1739_v27 = vadd.f32 -0.16666654, %v1738_v6  ;;  %v1986_v55 = vmul.u32 %v1984_v15, %v1959_v53 }
 0x226   :  { %vm3949_vm8 = vcmp.lt.s32.totalorder %v3948_v8, 0  ;;  %v1963_v56 = vmul.u32 %v1961_v11, %v1959_v53  ;;  %v1966_v40 = vmul.u32 %v1962_v21, %v1960_v42  ;;  %v1967_v41 = vshll.u32 %v1964_v39, 16 }
 0x227   :  { %v1864_v36 = vsel %vm3949_vm8, 0, %v3948_v8  ;;  %v1985_v12 = vmul.u32 %v1983_v61, %v1959_v53  ;;  %v1987_v14 = vmul.u32 %v1983_v61, %v1960_v42  ;;  %v1969_v52 = vshll.u32 %v1965_v0, 16  ;;  %v4051_v53 = vld [vmem:[#allocation7 + $0x8] ss:$0 sm:$0xff] }
 0x228   :  { %v1865_v26 = vsub.s32 32, %v1864_v36  ;;  %v1869_v16 = vsub.s32 4294967266, %v1864_v36  ;;  %vm1971_vm6 = vc.u32 %v1963_v56, %v1967_v41  ;;  %v1973_v38 = vadd.s32 %v1967_v41, %v1963_v56 }
 0x229   :  { %v1989_v22 = vshll.u32 %v1986_v55, 16  ;;  %v1866_v32 = vshll.u32 %v1857_v58, %v1864_v36  ;;  %v1972_v44 = vsel %vm1971_vm6, 1, %v6014_v50  ;;  %v1968_v6 = vshrl.u32 %v1964_v39, 16 }
 0x22a   :  { %v1867_v25 = vshrl.u32 %v1849_v43, %v1865_v26  ;;  %v1870_v10 = vadd.s32 127, %v1869_v16  ;;  %v1974_v1 = vadd.s32 %v1972_v44, %v1966_v40  ;;  %vm1975_vm14 = vc.u32 %v1973_v38, %v1969_v52 }
 0x22b   :  { %v1988_v8 = vmul.u32 %v1984_v15, %v1960_v42  ;;  %v1976_v31 = vsel %vm1975_vm14, 1, %v6014_v50  ;;  %vm1993_vm9 = vc.u32 %v1985_v12, %v1989_v22  ;;  %v1991_v4 = vshll.u32 %v1987_v14, 16 }
 0x22c   :  { %v1868_v11 = vor.u32 %v1867_v25, %v1866_v32  ;;  %v1871_v21 = vshll.u32 %v1870_v10, 23  ;;  %v1978_v61 = vadd.s32 %v1976_v31, %v1974_v1  ;;  %v1994_v56 = vsel %vm1993_vm9, 1, %v6014_v50 }
 0x22d   :  { %v1995_v41 = vadd.s32 %v1989_v22, %v1985_v12  ;;  %v1740_v58 = vmul.f32 %v1739_v27, %v5564_v37  ;;  %v1996_v36 = vadd.s32 %v1994_v56, %v1988_v8  ;;  %v789_v39 = vadd.f32 %v5452_v62, %v4568_v54 }
 0x22e   :  { %v1872_v43 = vor.u32 4788187, %v1871_v21  ;;  %v1947_v42 = vsel %vm1945_vm7, %v5588_v51, 2102212464  ;;  %v1970_v15 = vshrl.u32 %v1965_v0, 16  ;;  %v1979_v40 = vadd.s32 %v1978_v61, %v1968_v6 }
 0x22f   :  { %vm1997_vm11 = vc.u32 %v1995_v41, %v1991_v4  ;;  %vm1592_vm15 = vcmp.eq.s32.totalorder %v5626_v3, 0  ;;  %v1875_v1 = vcvt.s32.f32 %v1868_v11  ;;  %v5673_v16 = vmul.f32 %v4051_v53, %v789_v39 }
 0x230   :  { %v1873_v31 = vand.u32 2147483647, %v1872_v43  ;;  %v1998_v26 = vsel %vm1997_vm11, 1, %v6014_v50  ;;  %v1732_v27 = vadd.f32 -0.4999988, %v1731_v47  ;;  %v1946_v54 = vsel %vm1942_vm10, %v1926_v46, %v5582_v35 }
 0x231   :  { %v1990_v62 = vshrl.u32 %v1986_v55, 16  ;;  %v2000_v12 = vadd.s32 %v1998_v26, %v1996_v36  ;;  %vm2985_vm0 = vcmp.eq.s32.totalorder %v5535_v5, 2  ;;  %v1948_v0 = vsel %vm1944_vm4, %v5584_v49, %v1947_v42 }
 0x232   :  { %v1876_v51 = vmul.f32 %v1875_v1, %v1873_v31  ;;  %v5682_v52 = vadd.s32 %v1979_v40, %v1970_v15  ;;  %v2068_v38 = vand.u32 2139095040, %v5673_v16  ;;  %v1579_v22 = vadd.f32 1.0, %v5640_v45 }
 0x233   :  { %vm2982_vm1 = vcmp.eq.s32.totalorder %v5535_v5, 0  ;;  %v1741_v47 = vadd.f32 1.0, %v1740_v58  ;;  %v1992_v32 = vshrl.u32 %v1987_v14, 16  ;;  %v2001_v35 = vadd.s32 %v2000_v12, %v1990_v62 }
 0x234   :  { %vm1591_vm2 = vcmp.lt.s32.totalorder %v5626_v3, 2  ;;  %v1744_v46 = vadd.s32 3, %v5655_v48  ;;  %v1877_v55 = vxor.u32 2147483648, %v1876_v51  ;;  %v5689_v25 = vadd.s32 %v1995_v41, %v1991_v4 }
 0x235   :  { %v2069_v10 = vshrl.u32 %v2068_v38, 23  ;;  %v1593_v49 = vxor.u32 2147483648, %v5651_v19  ;;  %v1733_v44 = vmul.f32 %v1732_v27, %v5564_v37  ;;  %v1949_v45 = vsel %vm1943_vm13, %v1946_v54, %v1948_v0 }
 0x236   :  { %v2002_v6 = vadd.s32 %v2001_v35, %v1992_v32  ;;  %vm1595_vm3 = vcmp.eq.s32.totalorder %v5626_v3, 2  ;;  %vm2981_vm5 = vcmp.lt.s32.totalorder %v5535_v5, 2  ;;  %vm1757_vm7 = vcmp.lt.s32.totalorder %v5307_v63, 0 }
 0x237   :  { %vm2005_vm10 = vc.u32 %v5682_v52, %v5689_v25  ;;  %v3953_v4 = vadd.s32 4294967169, %v2069_v10  ;;  %vm1588_vm4 = vweird.f32 %v4963_v29  ;;  %v1596_v14 = vxor.u32 2147483648, %v1579_v22 }
 0x238   :  { %v1742_v8 = vmul.f32 %v1741_v47, %v5548_v33  ;;  %v1878_v37 = vsel %vm1757_vm7, %v1877_v55, %v1876_v51  ;;  %v2006_v23 = vadd.s32 1, %v2002_v6  ;;  %v3134_v11 = vand.u32 3, %v5655_v48 }
 0x239   :  { %v6025_v21 = vand.u32 2147483647, %v5307_v63  ;;  %v2003_v61 = vmul.u32 %v5608_v7, %v1949_v45  ;;  %v2075_v56 = vadd.s32 1, %v3953_v4  ;;  %v1594_v41 = vsel %vm1592_vm15, %v1579_v22, %v1593_v49 }
 0x23a   :  { %v1734_v58 = vadd.f32 1.0, %v1733_v44  ;;  %v1745_v33 = vand.u32 3, %v1744_v46  ;;  %v2007_v43 = vsel %vm2005_vm10, %v2006_v23, %v2002_v6  ;;  %v2065_v39 = vand.u32 2147483647, %v5673_v16 }
 0x23b   :  { %vm5707_vm12 = vcmp.le.f32.partialorder %v6025_v21, 0.7853982  ;;  %v2008_v48 = vadd.s32 %v2007_v43, %v2003_v61  ;;  %vm2076_vm13 = vcmp.gt.s32.totalorder %v2075_v56, 0  ;;  %v1597_v7 = vsel %vm1595_vm3, %v1596_v14, %v5651_v19 }
 0x23c   :  { %v5717_v36 = vsel %vm5707_vm12, %v5307_v63, %v1878_v37  ;;  %v2987_v42 = vsel %vm2985_vm0, %v1596_v14, %v5651_v19  ;;  %v1748_v15 = vxor.u32 2147483648, %v1742_v8  ;;  %v2077_v40 = vsel %vm2076_vm13, %v2075_v56, 0 }
 0x23d   :  { %v2984_v31 = vsel %vm2982_vm1, %v1579_v22, %v1593_v49  ;;  %vm3135_vm8 = vcmp.lt.s32.totalorder %v3134_v11, 2  ;;  %vm3136_vm6 = vcmp.eq.s32.totalorder %v3134_v11, 0  ;;  %v2009_v1 = vadd.s32 536870912, %v2008_v48 }
 0x23e   :  { %v1598_v26 = vsel %vm1591_vm2, %v1594_v41, %v1597_v7  ;;  %v1751_v27 = vxor.u32 2147483648, %v1734_v58  ;;  %v1879_v54 = vsub.s32 4, %v5586_v59  ;;  %v5733_v62 = vmul.f32 %v5717_v36, %v5717_v36 }
 0x23f   :  { %vm1747_vm14 = vcmp.eq.s32.totalorder %v1745_v33, 0  ;;  %v5735_v19 = vshrl.u32 %v2009_v1, 30  ;;  %v2072_v12 = vand.u32 8388607, %v2065_v39  ;;  %v2079_v51 = vand.u32 31, %v2077_v40 }
 0x240   :  { %v2988_v0 = vsel %vm2981_vm5, %v2984_v31, %v2987_v42  ;;  %vm1746_vm9 = vcmp.lt.s32.totalorder %v1745_v33, 2  ;;  %v1749_v3 = vsel %vm1747_vm14, %v1734_v58, %v1748_v15  ;;  %vm3139_vm11 = vcmp.eq.s32.totalorder %v3134_v11, 2 }
 0x241   :  { %v5743_v38 = vsel %vm1588_vm4, nan, %v1598_v26  ;;  %vm1750_vm15 = vcmp.eq.s32.totalorder %v1745_v33, 2  ;;  %v3138_v22 = vsel %vm3136_vm6, %v1734_v58, %v1748_v15  ;;  %v2011_v47 = vshll.u32 %v5735_v19, 30 }
 0x242   :  { %v1752_v32 = vsel %vm1750_vm15, %v1751_v27, %v1742_v8  ;;  %v3141_v35 = vsel %vm3139_vm11, %v1751_v27, %v1742_v8  ;;  %v1880_v46 = vsel %vm1757_vm7, %v1879_v54, %v5586_v59  ;;  %v1891_v5 = vmul.f32 -0.00019511016, %v5733_v62 }
 0x243   :  { %v1753_v55 = vsel %vm1746_vm9, %v1749_v3, %v1752_v32  ;;  %v2012_v10 = vsub.s32 %v2008_v48, %v2011_v47  ;;  %v2073_v49 = vor.u32 8388608, %v2072_v12  ;;  %v5751_v44 = vsub.s32 32, %v2079_v51 }
 0x244   :  { %v3616_v45 = vrot.slane %v5631_v28, 5  ;;  %v3646_v6 = vrot.slane %v5635_v17, 5  ;;  %vm1743_vm0 = vweird.f32 %v5070_v13  ;;  %v3142_v4 = vsel %vm3135_vm8, %v3138_v22, %v3141_v35 }
 0x245   :  { %v5759_v14 = vsel %vm1588_vm4, nan, %v2988_v0  ;;  %v1884_v59 = vmul.f32 -0.001358992, %v5733_v62  ;;  %vm2013_vm1 = vcmp.lt.s32.totalorder %v2012_v10, 0  ;;  %v2014_v8 = vsub.s32 0, %v2012_v10 }
 0x246   :  { %v3617_v37 = vrot.slane %v5743_v38, 4  ;;  %v5763_v23 = vsel %vm1743_vm0, nan, %v1753_v55  ;;  %v5767_v21 = vsel %vm5707_vm12, 0, %v1880_v46  ;;  %v1892_v61 = vadd.f32 0.008332121, %v1891_v5 }
 0x247   :  { %v5769_v13 = vsel %vm1743_vm0, nan, %v3142_v4  ;;  %v2015_v11 = vsel %vm2013_vm1, %v2014_v8, %v2012_v10  ;;  %v2083_v29 = vshrl.u32 %v6007_v24, %v5751_v44  ;;  %v5773_v56 = vshll.u32 %v2073_v49, 8 }
 0x248   :  { %v2004_v41 = vadd.s32 %v5689_v25, %v5682_v52  ;;  %v2016_v58 = vclz %v2015_v11  ;;  %v2086_v33 = vshrl.u32 %v6008_v30, %v5751_v44  ;;  %v2092_v53 = vshrl.u32 %v6020_v57, %v5751_v44 }
 0x249   :  { %v1885_v43 = vadd.f32 0.041655596, %v1884_v59  ;;  %v5781_v48 = vshrl.u32 %v2077_v40, 5  ;;  %v2082_v7 = vshll.u32 %v6009_v20, %v2079_v51  ;;  %v2089_v42 = vshrl.u32 %v6006_v18, %v5751_v44 }
 0x24a   :  { %v1893_v15 = vmul.f32 %v1892_v61, %v5733_v62  ;;  %v3951_v31 = vadd.s32 4294967294, %v2016_v58  ;;  %v2085_v52 = vshll.u32 %v6007_v24, %v2079_v51  ;;  %v2091_v25 = vshll.u32 %v6006_v18, %v2079_v51 }
 0x24b   :  { %v2084_v1 = vor.u32 %v2083_v29, %v2082_v7  ;;  %v2088_v26 = vshll.u32 %v6008_v30, %v2079_v51  ;;  %v2095_v27 = vshrl.u32 %v6010_v34, %v5751_v44  ;;  %v2114_v40 = vand.u32 65535, %v5773_v56 }
 0x24c   :  { %vm1912_vm2 = vcmp.lt.s32.totalorder %v5423_v9, 0  ;;  %vm3952_vm3 = vcmp.lt.s32.totalorder %v3951_v31, 0  ;;  %v2087_v54 = vor.u32 %v2086_v33, %v2085_v52  ;;  %v2093_v12 = vor.u32 %v2092_v53, %v2091_v25 }
 0x24d   :  { %v2094_v0 = vshll.u32 %v6020_v57, %v2079_v51  ;;  %v1886_v3 = vmul.f32 %v1885_v43, %v5733_v62  ;;  %v2019_v24 = vsel %vm3952_vm3, 0, %v3951_v31  ;;  %v2090_v22 = vor.u32 %v2089_v42, %v2088_v26 }
 0x24e   :  { %v2115_v18 = vshrl.u32 %v5773_v56, 16  ;;  %v1894_v47 = vadd.f32 -0.16666654, %v1893_v15  ;;  %v2020_v30 = vsub.s32 32, %v2019_v24  ;;  %vm2097_vm5 = vcmp.lt.s32.totalorder %v5781_v48, 1 }
 0x24f   :  { %v2096_v32 = vor.u32 %v2095_v27, %v2094_v0  ;;  %v2021_v34 = vshll.u32 %v2012_v10, %v2019_v24  ;;  %v2024_v35 = vsub.s32 4294967266, %v2019_v24  ;;  %v2034_v46 = vsub.s32 4, %v5735_v19 }
 0x250   :  { %vm2100_vm7 = vcmp.lt.s32.totalorder %v5781_v48, 4  ;;  %v2022_v5 = vshrl.u32 %v2004_v41, %v2020_v30  ;;  %vm2099_vm10 = vcmp.lt.s32.totalorder %v5781_v48, 3  ;;  %v2105_v57 = vsel %vm2097_vm5, %v2084_v1, %v2087_v54 }
 0x251   :  { %v2106_v51 = vsel %vm2100_vm7, %v2093_v12, 920167782  ;;  %v2025_v55 = vadd.s32 127, %v2024_v35  ;;  %vm2098_vm4 = vcmp.lt.s32.totalorder %v5781_v48, 2  ;;  %v2109_v10 = vsel %vm2097_vm5, %v2087_v54, %v2090_v22 }
 0x252   :  { %v2107_v49 = vsel %vm2099_vm10, %v2090_v22, %v2106_v51  ;;  %v2023_v4 = vor.u32 %v2022_v5, %v2021_v34  ;;  %v2102_v59 = vsel %vm2100_vm7, %v2090_v22, 2102212464  ;;  %v2110_v61 = vsel %vm2100_vm7, %v2096_v32, 1326507024  ;;  %v6031_v34 = vld [vmem:[#allocation16_spill] sm:$0xff] }
 0x253   :  { %v2108_v8 = vsel %vm2098_vm4, %v2105_v57, %v2107_v49  ;;  %v2026_v11 = vshll.u32 %v2025_v55, 23  ;;  %v2111_v29 = vsel %vm2099_vm10, %v2093_v12, %v2110_v61  ;;  %v1887_v33 = vadd.f32 -0.4999988, %v1886_v3 }
 0x254   :  { %v2138_v41 = vand.u32 65535, %v2108_v8  ;;  %v2139_v58 = vshrl.u32 %v2108_v8, 16  ;;  %v1895_v53 = vmul.f32 %v1894_v47, %v5733_v62  ;;  %v2081_v43 = vshrl.u32 %v6009_v20, %v5751_v44 }
 0x255   :  { %v2112_v7 = vsel %vm2098_vm4, %v2109_v10, %v2111_v29  ;;  %v6028_v42 = vand.u32 2147483647, %v5423_v9  ;;  %v2027_v31 = vor.u32 4788187, %v2026_v11  ;;  %v2035_v52 = vsel %vm1912_vm2, %v2034_v46, %v5735_v19 }
 0x256   :  { %v2116_v25 = vand.u32 65535, %v2112_v7  ;;  %v2117_v26 = vshrl.u32 %v2112_v7, 16  ;;  %v2101_v27 = vsel %vm2097_vm5, %v2081_v43, %v2084_v1  ;;  %v2103_v20 = vsel %vm2099_vm10, %v2087_v54, %v2102_v59 }
 0x257   :  { %vm5819_vm12 = vcmp.le.f32.partialorder %v6028_v42, 0.7853982  ;;  %v2141_v44 = vmul.u32 %v2139_v58, %v2114_v40  ;;  %v2142_v12 = vmul.u32 %v2138_v41, %v2115_v18  ;;  %v2028_v0 = vand.u32 2147483647, %v2027_v31 }
 0x258   :  { %v2030_v3 = vcvt.s32.f32 %v2023_v4  ;;  %v2119_v24 = vmul.u32 %v2117_v26, %v2114_v40  ;;  %v2120_v22 = vmul.u32 %v2116_v25, %v2115_v18  ;;  %v2140_v47 = vmul.u32 %v2138_v41, %v2114_v40 }
 0x259   :  { %v2143_v30 = vmul.u32 %v2139_v58, %v2115_v18  ;;  %v2144_v32 = vshll.u32 %v2141_v44, 16  ;;  %v954_v35 = vmul.f32 -0.001358992, %v6031_v34  ;;  %v2118_v46 = vmul.u32 %v2116_v25, %v2114_v40 }
 0x25a   :  { %v2031_v19 = vmul.f32 %v2030_v3, %v2028_v0  ;;  %v2121_v5 = vmul.u32 %v2117_v26, %v2115_v18  ;;  %v2122_v57 = vshll.u32 %v2119_v24, 16  ;;  %v2124_v51 = vshll.u32 %v2120_v22, 16 }
 0x25b   :  { %v2146_v1 = vshll.u32 %v2142_v12, 16  ;;  %vm2148_vm13 = vc.u32 %v2140_v47, %v2144_v32  ;;  %v2150_v55 = vadd.s32 %v2144_v32, %v2140_v47  ;;  %v955_v8 = vadd.f32 0.041655596, %v954_v35 }
 0x25c   :  { %v2032_v54 = vxor.u32 2147483648, %v2031_v19  ;;  %vm2126_vm8 = vc.u32 %v2118_v46, %v2122_v57  ;;  %v2128_v49 = vadd.s32 %v2122_v57, %v2118_v46  ;;  %v2149_v10 = vsel %vm2148_vm13, 1, %v6014_v50 }
 0x25d   :  { %v2127_v4 = vsel %vm2126_vm8, 1, %v6014_v50  ;;  %v2151_v59 = vadd.s32 %v2149_v10, %v2143_v30  ;;  %vm2152_vm6 = vc.u32 %v2150_v55, %v2146_v1  ;;  %v2145_v41 = vshrl.u32 %v2141_v44, 16 }
 0x25e   :  { %v2033_v61 = vsel %vm1912_vm2, %v2032_v54, %v2031_v19  ;;  %v2129_v40 = vadd.s32 %v2127_v4, %v2121_v5  ;;  %vm2130_vm14 = vc.u32 %v2128_v49, %v2124_v51  ;;  %v2153_v18 = vsel %vm2152_vm6, 1, %v6014_v50 }
 0x25f   :  { %v5839_v11 = vsel %vm5819_vm12, %v5423_v9, %v2033_v61  ;;  %v2131_v29 = vsel %vm2130_vm14, 1, %v6014_v50  ;;  %v2155_v58 = vadd.s32 %v2153_v18, %v2151_v59  ;;  %v1896_v43 = vadd.f32 1.0, %v1895_v53 }
 0x260   :  { %v2038_v7 = vmul.f32 %v5839_v11, %v5839_v11  ;;  %v2123_v42 = vshrl.u32 %v2119_v24, 16  ;;  %v2133_v31 = vadd.s32 %v2131_v29, %v2129_v40  ;;  %v2104_v25 = vsel %vm2098_vm4, %v2101_v27, %v2103_v20 }
 0x261   :  { %v2125_v26 = vshrl.u32 %v2120_v22, 16  ;;  %v2147_v0 = vshrl.u32 %v2142_v12, 16  ;;  %v2156_v3 = vadd.s32 %v2155_v58, %v2145_v41  ;;  %v956_v35 = vmul.f32 %v955_v8, %v6031_v34 }
 0x262   :  { %v2039_v47 = vmul.f32 -0.001358992, %v2038_v7  ;;  %v2046_v30 = vmul.f32 -0.00019511016, %v2038_v7  ;;  %v2134_v32 = vadd.s32 %v2133_v31, %v2123_v42  ;;  %v1888_v50 = vmul.f32 %v1887_v33, %v5733_v62 }
 0x263   :  { %v1899_v53 = vadd.s32 3, %v5767_v21  ;;  %v5850_v44 = vand.u32 3, %v5767_v21  ;;  %v2157_v24 = vadd.s32 %v2156_v3, %v2147_v0  ;;  %v5854_v27 = vadd.s32 %v2150_v55, %v2146_v1  ;;  %v6033_v0 = vld [vmem:[#allocation17_spill] sm:$0xff] }
 0x264   :  { %v2040_v19 = vadd.f32 0.041655596, %v2039_v47  ;;  %v2047_v46 = vadd.f32 0.008332121, %v2046_v30  ;;  %v5852_v48 = vadd.s32 %v2134_v32, %v2125_v26  ;;  %v1897_v20 = vmul.f32 %v1896_v43, %v5717_v36 }
 0x265   :  { %v2037_v12 = vsel %vm5819_vm12, 0, %v2035_v52  ;;  %v2158_v22 = vmul.u32 %v5773_v56, %v2104_v25  ;;  %v2161_v62 = vadd.s32 1, %v2157_v24  ;;  %v957_v21 = vadd.f32 -0.4999988, %v956_v35 }
 0x266   :  { %v2041_v33 = vmul.f32 %v2040_v19, %v2038_v7  ;;  %v2048_v5 = vmul.f32 %v2047_v46, %v2038_v7  ;;  %vm2160_vm9 = vc.u32 %v5852_v48, %v5854_v27  ;;  %v3647_v57 = vrot.slane %v5759_v14, 4 }
 0x267   :  { %v3618_v51 = vrot.slane %v5763_v23, 3  ;;  %v1900_v1 = vand.u32 3, %v1899_v53  ;;  %v2162_v55 = vsel %vm2160_vm9, %v2161_v62, %v2157_v24  ;;  %v1889_v54 = vadd.f32 1.0, %v1888_v50 }
 0x268   :  { %v2042_v36 = vadd.f32 -0.4999988, %v2041_v33  ;;  %v2049_v49 = vadd.f32 -0.16666654, %v2048_v5  ;;  %v2163_v15 = vadd.s32 %v2162_v55, %v2158_v22  ;;  %v3648_v52 = vrot.slane %v5769_v13, 3 }
 0x269   :  { %v1903_v56 = vxor.u32 2147483648, %v1897_v20  ;;  %vm3289_vm11 = vcmp.lt.s32.totalorder %v5850_v44, 2  ;;  %v2054_v10 = vadd.s32 3, %v2037_v12  ;;  %v958_v61 = vmul.f32 %v957_v21, %v6031_v34 }
 0x26a   :  { %v2043_v4 = vmul.f32 %v2042_v36, %v2038_v7  ;;  %v2050_v59 = vmul.f32 %v2049_v49, %v2038_v7  ;;  %v2164_v8 = vadd.s32 536870912, %v2163_v15  ;;  %vm1898_vm15 = vweird.f32 %v5307_v63  ;;  %v6032_v7 = vld [vmem:[#allocation18_spill] sm:$0xff] }
 0x26b   :  { %vm1901_vm0 = vcmp.lt.s32.totalorder %v1900_v1, 2  ;;  %vm3290_vm1 = vcmp.eq.s32.totalorder %v5850_v44, 0  ;;  %vm3293_vm2 = vcmp.eq.s32.totalorder %v5850_v44, 2  ;;  %v3442_v40 = vand.u32 3, %v2037_v12 }
 0x26c   :  { %vm1902_vm3 = vcmp.eq.s32.totalorder %v1900_v1, 0  ;;  %v1906_v18 = vxor.u32 2147483648, %v1889_v54  ;;  %v2051_v29 = vadd.f32 1.0, %v2050_v59  ;;  %v5870_v41 = vshrl.u32 %v2164_v8, 30 }
 0x26d   :  { %vm1905_vm5 = vcmp.eq.s32.totalorder %v1900_v1, 2  ;;  %v2044_v58 = vadd.f32 1.0, %v2043_v4  ;;  %v2055_v43 = vand.u32 3, %v2054_v10  ;;  %vm972_vm7 = vcmp.eq.s32.totalorder %v6032_v7, 0 }
 0x26e   :  { %v1904_v42 = vsel %vm1902_vm3, %v1889_v54, %v1903_v56  ;;  %v2052_v34 = vmul.f32 %v2051_v29, %v5839_v11  ;;  %v2166_v31 = vshll.u32 %v5870_v41, 30  ;;  %v959_v25 = vadd.f32 1.0, %v958_v61  ;;  %v6034_v11 = vld [vmem:[#allocation15_spill] sm:$0xff] }
 0x26f   :  { %vm971_vm10 = vcmp.lt.s32.totalorder %v6032_v7, 2  ;;  %v3292_v26 = vsel %vm3290_vm1, %v1889_v54, %v1903_v56  ;;  %vm3443_vm4 = vcmp.lt.s32.totalorder %v3442_v40, 2  ;;  %vm975_vm12 = vcmp.eq.s32.totalorder %v6032_v7, 2 }
 0x270   :  { %vm2366_vm13 = vcmp.eq.s32.totalorder %v6033_v0, 0  ;;  %v1907_v3 = vsel %vm1905_vm5, %v1906_v18, %v1897_v20  ;;  %v2058_v47 = vxor.u32 2147483648, %v2052_v34  ;;  %vm3444_vm6 = vcmp.eq.s32.totalorder %v3442_v40, 0 }
 0x271   :  { %v2167_v30 = vsub.s32 %v2163_v15, %v2166_v31  ;;  %vm2365_vm14 = vcmp.lt.s32.totalorder %v6033_v0, 2  ;;  %v1908_v32 = vsel %vm1901_vm0, %v1904_v42, %v1907_v3  ;;  %v3295_v35 = vsel %vm3293_vm2, %v1906_v18, %v1897_v20 }
 0x272   :  { %vm2057_vm1 = vcmp.eq.s32.totalorder %v2055_v43, 0  ;;  %v2061_v50 = vxor.u32 2147483648, %v2044_v58  ;;  %v3296_v53 = vsel %vm3289_vm11, %v3292_v26, %v3295_v35  ;;  %v976_v19 = vxor.u32 2147483648, %v959_v25  ;;  %v6046_v35 = vld [vmem:[#allocation21_spill] sm:$0xff] }
 0x273   :  { %vm2168_vm3 = vcmp.lt.s32.totalorder %v2167_v30, 0  ;;  %v2169_v24 = vsub.s32 0, %v2167_v30  ;;  %vm2056_vm5 = vcmp.lt.s32.totalorder %v2055_v43, 2  ;;  %v2059_v46 = vsel %vm2057_vm1, %v2044_v58, %v2058_v47 }
 0x274   :  { %v3446_v12 = vsel %vm3444_vm6, %v2044_v58, %v2058_v47  ;;  %vm3447_vm8 = vcmp.eq.s32.totalorder %v3442_v40, 2  ;;  %v1909_v22 = vsel %vm1898_vm15, nan, %v1908_v32  ;;  %vm2060_vm9 = vcmp.eq.s32.totalorder %v2055_v43, 2  ;;  %v821_v47 = vld [vmem:[#allocation8] sm:$0xff] }
 0x275   :  { %v2170_v62 = vsel %vm2168_vm3, %v2169_v24, %v2167_v30  ;;  %v6035_v33 = vxor.u32 2147483648, %v5258_v60  ;;  %v3297_v44 = vsel %vm1898_vm15, nan, %v3296_v53  ;;  %v2062_v5 = vsel %vm2060_vm9, %v2061_v50, %v2052_v34  ;;  %v6044_v32 = vld [vmem:[#allocation20_spill] sm:$0xff] }
 0x276   :  { %v3449_v21 = vsel %vm3447_vm8, %v2061_v50, %v2052_v34  ;;  %v2171_v1 = vclz %v2170_v62  ;;  %v2063_v55 = vsel %vm2056_vm5, %v2059_v46, %v2062_v5  ;;  %v977_v36 = vsel %vm975_vm12, %v976_v19, %v5258_v60 }
 0x277   :  { %v974_v20 = vsel %vm972_vm7, %v959_v25, %v6035_v33  ;;  %v3450_v54 = vsel %vm3443_vm4, %v3446_v12, %v3449_v21  ;;  %v6036_v49 = vmov %v6035_v33  ;;  %v3619_v56 = vrot.slane %v1909_v22, 2 }
 0x278   :  { %v2368_v15 = vsel %vm2366_vm13, %v959_v25, %v6036_v49  ;;  %v3954_v10 = vadd.s32 4294967294, %v2171_v1  ;;  %v978_v63 = vsel %vm971_vm10, %v974_v20, %v977_v36  ;;  %vm2369_vm11 = vcmp.eq.s32.totalorder %v6033_v0, 2 }
 0x279   :  { %v3649_v4 = vrot.slane %v3297_v44, 2  ;;  %v2371_v59 = vsel %vm2369_vm11, %v976_v19, %v5258_v60  ;;  %vm3621_vm15 = vcmask 1040384   ;;  %vm3623_vm0 = vcmask 1042434  }
 0x27a   :  { %vm6037_vm2 = vweird.f32 %v5423_v9  ;;  %vm3955_vm4 = vcmp.lt.s32.totalorder %v3954_v10, 0  ;;  %v2372_v40 = vsel %vm2365_vm14, %v2368_v15, %v2371_v59  ;;  %v2159_v18 = vadd.s32 %v5854_v27, %v5852_v48  ;;  %v6042_v48 = vld [vmem:[#allocation19_spill] sm:$0xff] }
 0x27b   :  { %v2064_v8 = vsel %vm6037_vm2, nan, %v2063_v55  ;;  %vm6038_vm7 = vmmov %vm6037_vm2  ;;  %v2174_v29 = vsel %vm3955_vm4, 0, %v3954_v10  ;;  %vm6039_vm10 = vweird.f32 %v6034_v11  ;;  %vm3625_vm12 = vcmask 1041408  }
 0x27c   :  { %v3451_v61 = vsel %vm6038_vm7, nan, %v3450_v54  ;;  %v979_v58 = vsel %vm6039_vm10, nan, %v978_v63  ;;  %v2175_v60 = vsub.s32 32, %v2174_v29  ;;  %v2179_v43 = vsub.s32 4294967266, %v2174_v29  ;;  %vm6041_vm8 = vmmov %vm6039_vm10 }
 0x27d   :  { %v6040_v7 = vrot.slane %v5378_v2, 6  ;;  %vm3627_vm13 = vcmask 1044484   ;;  %v3620_v42 = vrot.slane %v2064_v8, 1  ;;  %v3650_v34 = vrot.slane %v3451_v61, 1 }
 0x27e   :  { %v2373_v31 = vsel %vm6041_vm8, nan, %v2372_v40  ;;  %v6043_v27 = vrot.slane %v6042_v48, 7  ;;  %v2176_v26 = vshll.u32 %v2167_v30, %v2174_v29  ;;  %v2177_v0 = vshrl.u32 %v2159_v18, %v2175_v60  ;;  %v822_v29 = vld [vmem:[#allocation8 + $0x8] sm:$0x1] }
 0x27f   :  { %v3624_v9 = vsel %vm3623_vm0, %v6040_v7, %v3616_v45  ;;  %v2180_v3 = vadd.s32 127, %v2179_v43  ;;  %v6045_v28 = vrot.slane %v6044_v32, 7  ;;  %v3628_v11 = vsel %vm3627_vm13, %v3617_v37, %v3618_v51 }
 0x280   :  { %v3622_v25 = vsel %vm3621_vm15, %v979_v58, %v6043_v27  ;;  %v6047_v50 = vrot.slane %v6046_v35, 6  ;;  %v3654_v53 = vsel %vm3627_vm13, %v3647_v57, %v3648_v52  ;;  %v2178_v24 = vor.u32 %v2177_v0, %v2176_v26 }
 0x281   :  { %v3651_v2 = vsel %vm3621_vm15, %v2373_v31, %v6045_v28  ;;  %v3626_v45 = vsel %vm3625_vm12, %v3622_v25, %v3624_v9  ;;  %v2181_v19 = vshll.u32 %v2180_v3, 23  ;;  %vm3629_vm6 = vcmask 1046534  }
 0x282   :  { %v3652_v30 = vsel %vm3623_vm0, %v6047_v50, %v3646_v6  ;;  %vm3631_vm14 = vcmask 1045508   ;;  %vm823_vm9 = vcmp.gt.f32.partialorder %v821_v47, 0.5  ;;  %v3630_v23 = vsel %vm3629_vm6, %v3619_v56, %v3620_v42 }
 0x283   :  { %vm3633_vm1 = vcmask 1043456   ;;  %v3655_v38 = vsel %vm3629_vm6, %v3649_v4, %v3650_v34  ;;  %v2182_v37 = vor.u32 4788187, %v2181_v19  ;;  %v3632_v51 = vsel %vm3631_vm14, %v3628_v11, %v3630_v23 }
 0x284   :  { %v3653_v17 = vsel %vm3625_vm12, %v3651_v2, %v3652_v30  ;;  %v3656_v46 = vsel %vm3631_vm14, %v3654_v53, %v3655_v38  ;;  %v3634_v12 = vsel %vm3633_vm1, %v3626_v45, %v3632_v51  ;;  %v2185_v13 = vcvt.s32.f32 %v2178_v24 }
 0x285   :  { %v3657_v6 = vsel %vm3633_vm1, %v3653_v17, %v3656_v46  ;;  %v2183_v22 = vand.u32 2147483647, %v2182_v37  ;;  %vm2067_vm3 = vcmp.lt.s32.totalorder %v5673_v16, 0  ;;  %vm2066_vm5 = vcmp.le.f32.partialorder %v2065_v39, 0.7853982 }
 0x286   :  { %v3659_v62 = vsel %vm823_vm9, %v3634_v12, %v3657_v6  ;;  %v2189_v33 = vsub.s32 4, %v5870_v41  ;;  %v3662_v60 = vlaneseq  ;;  %vm824_vm2 = vcmp.gt.f32.partialorder %v822_v29, 0.5 }
 0x287   :  { %3661 = vst [vmem:[#allocation10] sm:$0xff] %v3659_v62  ;;  %v2186_v14 = vmul.f32 %v2185_v13, %v2183_v22  ;;  %vm2208_vm12 = vweird.f32 %v5673_v16 }
 0x288   :  { %v2190_v1 = vsel %vm2067_vm3, %v2189_v33, %v5870_v41  ;;  %vm3664_vm13 = vcmp.lt.s32.totalorder %v3662_v60, 128 }
 0x289   :  { %v2187_v57 = vxor.u32 2147483648, %v2186_v14  ;;  %v2192_v36 = vsel %vm2066_vm5, 0, %v2190_v1 }
 0x28a   :  { %v2209_v63 = vadd.s32 3, %v2192_v36  ;;  %v3596_v61 = vand.u32 3, %v2192_v36 }
 0x28b   :  { %v2188_v52 = vsel %vm2067_vm3, %v2187_v57, %v2186_v14 }
 0x28c   :  { %v2191_v20 = vsel %vm2066_vm5, %v5673_v16, %v2188_v52  ;;  %v2210_v40 = vand.u32 3, %v2209_v63  ;;  %vm3597_vm11 = vcmp.lt.s32.totalorder %v3596_v61, 2  ;;  %vm3598_vm15 = vcmp.eq.s32.totalorder %v3596_v61, 0 }
 0x28d   :  { %v2193_v44 = vmul.f32 %v2191_v20, %v2191_v20  ;;  %vm3601_vm0 = vcmp.eq.s32.totalorder %v3596_v61, 2 }
 0x28e   :  { %vm2211_vm7 = vcmp.lt.s32.totalorder %v2210_v40, 2  ;;  %vm2212_vm4 = vcmp.eq.s32.totalorder %v2210_v40, 0  ;;  %vm2215_vm10 = vcmp.eq.s32.totalorder %v2210_v40, 2 }
 0x28f   :  { %v2201_v5 = vmul.f32 -0.00019511016, %v2193_v44  ;;  %v2194_v21 = vmul.f32 -0.001358992, %v2193_v44 }
 0x291   :  { %v2202_v55 = vadd.f32 0.008332121, %v2201_v5  ;;  %v2195_v54 = vadd.f32 0.041655596, %v2194_v21 }
 0x293   :  { %v2203_v49 = vmul.f32 %v2202_v55, %v2193_v44  ;;  %v2196_v15 = vmul.f32 %v2195_v54, %v2193_v44 }
 0x295   :  { %v2204_v56 = vadd.f32 -0.16666654, %v2203_v49  ;;  %v2197_v10 = vadd.f32 -0.4999988, %v2196_v15 }
 0x297   :  { %v2205_v4 = vmul.f32 %v2204_v56, %v2193_v44  ;;  %v2198_v39 = vmul.f32 %v2197_v10, %v2193_v44 }
 0x299   :  { %v2206_v59 = vadd.f32 1.0, %v2205_v4  ;;  %v2199_v8 = vadd.f32 1.0, %v2198_v39 }
 0x29b   :  { %v2207_v18 = vmul.f32 %v2206_v59, %v2191_v20  ;;  %v2216_v58 = vxor.u32 2147483648, %v2199_v8 }
 0x29d   :  { %v2213_v43 = vxor.u32 2147483648, %v2207_v18  ;;  %v2217_v7 = vsel %vm2215_vm10, %v2216_v58, %v2207_v18  ;;  %v3603_v42 = vsel %vm3601_vm0, %v2216_v58, %v2207_v18 }
 0x29f   :  { %v2214_v41 = vsel %vm2212_vm4, %v2199_v8, %v2213_v43  ;;  %v3600_v9 = vsel %vm3598_vm15, %v2199_v8, %v2213_v43 }
 0x2a0   :  { %v2218_v34 = vsel %vm2211_vm7, %v2214_v41, %v2217_v7  ;;  %v3604_v31 = vsel %vm3597_vm11, %v3600_v9, %v3603_v42 }
 0x2a1   :  { %v2219_v48 = vsel %vm2208_vm12, nan, %v2218_v34  ;;  %v3605_v27 = vsel %vm2208_vm12, nan, %v3604_v31 }
 0x2a2   :  { %v3660_v25 = vsel %vm824_vm2, %v2219_v48, %v3605_v27 }
 0x2a3   :  { %3666 = vst.msk [vmem:[#allocation10 + $0x8] sm:$0x1] %vm3664_vm13, %v3660_v25 }
 0x2a4   :  { %3677 = dma.vmem_to_hbm [thread:$0]  %s3673_s3, 144, %s3675_s11, [#allocation4]  }
 0x2a5   :  { %4179 = dma.done.wait [#allocation4], 144  }
 0x2a6   :  { %4180 = vsyncadd [#allocation4], 4294967152 }
 0x2a7   :  { %3682 = vsyncpa [#allocation3], 1 }
 0x2a8   :  { %3683 = vsyncpa [#allocation6], 1 }
 0x2a9   :  { %3684 = vsyncpa [#allocation9], 1 }
 0x2aa   :  { %3685 = vsyncpa [#allocation4], 1 }

</bundles_post_ra>
